<compile_context>
chip_gen: v5e
topology: v5e:2x2
jax: 0.10.0
libtpu: 0.0.40
codegen_flags: <defaults>
</compile_context>

<pallas_src>
import functools

import numpy as np
import jax
import jax.numpy as jnp
from jax import lax
from jax.experimental import pallas as pl
from jax.experimental.pallas import tpu as pltpu

EPS = 1e-5  # PyTorch InstanceNorm2d default eps


def _residual_block_kernel(xp_ref, w1_ref, w2_ref, row_ref, col_ref,
                           o_ref, buf_ref, *, H, W, C, G):
    """One grid step == one batch sample, all work in (C, Pp) flat layout."""
    Hp, Wp = H + 2, W + 2
    Pp = Hp * Wp

    # Padded-flat coordinate ids (precomputed in the wrapper; no in-kernel
    # integer div/mod).
    row = row_ref[...]                                   # (1, Pp) int32
    col = col_ref[...]                                   # (1, Pp) int32
    interior = (row >= 1) & (row <= H) & (col >= 1) & (col <= W)
    inv_cnt = 1.0 / float(H * W)

    # Zero only the two guard bands (not the whole scratch): conv taps at ring
    # positions may read them; the interior is fully overwritten below.
    buf_ref[:, :G] = jnp.zeros((C, G), jnp.bfloat16)
    buf_ref[:, G + Pp:] = jnp.zeros((C, G), jnp.bfloat16)

    def conv3x3(w_ref):
        # 3x3 conv over the activation staged in buf_ref[:, G:G+Pp] (bf16).
        # Tap (dy, dx) == flat offset (dy-1)*Wp + (dx-1): a plain VMEM window
        # read.  Straight-line bf16 MXU matmuls with f32 accumulation, no
        # interleaved VPU work (bias removed: it cancels in InstanceNorm).
        acc = jnp.zeros((C, Pp), jnp.float32)
        for dy in range(3):
            for dx in range(3):
                k = dy * 3 + dx
                off = G + (dy - 1) * Wp + (dx - 1)
                acc = acc + jnp.dot(w_ref[k], buf_ref[:, off:off + Pp],
                                    preferred_element_type=jnp.float32)
        return acc

    def instance_norm(y):
        # Centered two-pass stats (interior lanes only) to avoid the
        # E[x^2] - mean^2 cancellation flagged in review.
        ym = jnp.where(interior, y, 0.0)
        mean = jnp.sum(ym, axis=1, keepdims=True) * inv_cnt       # (C, 1)
        d = jnp.where(interior, y - mean, 0.0)
        var = jnp.sum(d * d, axis=1, keepdims=True) * inv_cnt     # (C, 1)
        return (y - mean) * lax.rsqrt(var + EPS)                  # rsqrt -> EUP

    # ---- stage reflection-padded input (bf16 copy for the MXU) -------------
    buf_ref[:, G:G + Pp] = xp_ref[0].astype(jnp.bfloat16)

    # ---- conv1 -> InstanceNorm -> ReLU --------------------------------------
    h = jnp.maximum(instance_norm(conv3x3(w1_ref)), 0.0)          # (C, Pp) f32

    # ---- reflection-pad h in the same flat layout ---------------------------
    # One staging store + one final store.  Ring lanes are copies of interior
    # lanes at constant flat shifts; corners are handled with their own 2-D
    # reflected source so no intermediate column-filled slab store is needed.
    # Selects run in f32 (v5e has no bf16 VPU path); one bf16 cast at the end.
    buf_ref[:, G:G + Pp] = h.astype(jnp.bfloat16)                 # staging

    def win(off):
        return buf_ref[:, G + off:G + off + Pp].astype(jnp.float32)

    hp = h
    hp = jnp.where(col == 0,      win(2),        hp)   # col 0     <- col 2
    hp = jnp.where(col == Wp - 1, win(-2),       hp)   # col Wp-1  <- col Wp-3
    hp = jnp.where(row == 0,      win(2 * Wp),   hp)   # row 0     <- row 2
    hp = jnp.where(row == Hp - 1, win(-2 * Wp),  hp)   # row Hp-1  <- row Hp-3
    hp = jnp.where((row == 0) & (col == 0),           win(2 * Wp + 2),  hp)
    hp = jnp.where((row == 0) & (col == Wp - 1),      win(2 * Wp - 2),  hp)
    hp = jnp.where((row == Hp - 1) & (col == 0),      win(-2 * Wp + 2), hp)
    hp = jnp.where((row == Hp - 1) & (col == Wp - 1), win(-2 * Wp - 2), hp)
    buf_ref[:, G:G + Pp] = hp.astype(jnp.bfloat16)                # final slab

    # ---- conv2 -> InstanceNorm -> residual add (exact f32 input) ------------
    y2 = instance_norm(conv3x3(w2_ref))

    # Write only the contiguous interior-rows region (C, H*Wp); the wrapper's
    # fix-up becomes a pure last-dim column crop (no padded ring rows in HBM).
    o_ref[0] = xp_ref[0, :, Wp:Wp + H * Wp] + y2[:, Wp:Wp + H * Wp]


def residual_block_pallas(x_nchw, w1, b1, w2, b2):
    """Forward of ResidualBlock(dim=C, use_dropout=False).

    x_nchw: (N, C, H, W) f32; w*: (C, C, 3, 3); b*: (C,).
    b1/b2 are accepted for API parity but never shipped to the kernel: a
    per-channel bias added before an affine-less InstanceNorm cancels exactly.
    """
    del b1, b2  # mathematically dead under InstanceNorm2d(affine=False)

    N, C, H, W = x_nchw.shape
    assert H >= 2 and W >= 2, "ReflectionPad2d(1) requires spatial size >= 2"
    Hp, Wp = H + 2, W + 2
    Pp = Hp * Wp
    # Guard width: must cover the largest window-read shift (2*Wp + 2),
    # rounded up to a lane-aligned multiple of 128.
    G = ((2 * Wp + 2 + 127) // 128) * 128

    x = x_nchw.astype(jnp.float32)
    # Reflection pad once in the wrapper (cheap fused XLA memory pass), then
    # flatten the padded spatial dims onto the lane axis.  No layout transpose.
    xp = jnp.pad(x, ((0, 0), (0, 0), (1, 1), (1, 1)), mode="reflect")
    xp_flat = xp.reshape(N, C, Pp)

    # Pack weights for the per-tap matmul: (O, I, 3, 3) -> (9, O, I), bf16.
    # At C>=128 the per-tap contraction K=C already feeds the MXU well; at the
    # tiny demo C the kernel is overhead-dominated regardless.
    def pack(w):
        return jnp.transpose(w, (2, 3, 0, 1)).reshape(9, C, C).astype(jnp.bfloat16)

    w1p, w2p = pack(w1), pack(w2)

    # Constant padded-flat row/col ids (avoid integer div/mod inside the kernel).
    qs = np.arange(Pp, dtype=np.int32)
    row_ids = jnp.asarray((qs // Wp).reshape(1, Pp), dtype=jnp.int32)
    col_ids = jnp.asarray((qs % Wp).reshape(1, Pp), dtype=jnp.int32)

    kernel = functools.partial(_residual_block_kernel, H=H, W=W, C=C, G=G)

    out_flat = pl.pallas_call(
        kernel,
        out_shape=jax.ShapeDtypeStruct((N, C, H * Wp), jnp.float32),
        grid_spec=pltpu.PrefetchScalarGridSpec(
            num_scalar_prefetch=0,
            grid=(N,),
            in_specs=[
                pl.BlockSpec((1, C, Pp), lambda n: (n, 0, 0)),   # padded input
                pl.BlockSpec((9, C, C), lambda n: (0, 0, 0)),    # w1 (bf16)
                pl.BlockSpec((9, C, C), lambda n: (0, 0, 0)),    # w2 (bf16)
                pl.BlockSpec((1, Pp), lambda n: (0, 0)),         # row ids
                pl.BlockSpec((1, Pp), lambda n: (0, 0)),         # col ids
            ],
            out_specs=pl.BlockSpec((1, C, H * Wp), lambda n: (n, 0, 0)),
            scratch_shapes=[pltpu.VMEM((C, 2 * G + Pp), jnp.bfloat16)],
        ),
        compiler_params=pltpu.CompilerParams(
            dimension_semantics=("parallel",),
            # 48 MiB: above v5e's 16 MiB scoped default, under v7x's 64 MiB
            # physical VMEM.  TODO(synk): budget per generation (raise on
            # v6e's 128 MiB, shrink per-step blocks on v7x) once the spatial
            # chunk axis exists.
            vmem_limit_bytes=48 * 1024 * 1024,
        ),
    )(xp_flat, w1p, w2p, row_ids, col_ids)

    # Pure last-dim column crop: drop the reflected ring columns.
    out = out_flat.reshape(N, C, H, Wp)[:, :, :, 1:W + 1]
    return out


# ---------------- pure-JAX reference (NCHW, mirrors PyTorch) ----------------
def _ref_residual_block(x, w1, b1, w2, b2):
    def conv_in(x, w, b):
        xp = jnp.pad(x, ((0, 0), (0, 0), (1, 1), (1, 1)), mode="reflect")
        y = lax.conv_general_dilated(
            xp, w, window_strides=(1, 1), padding="VALID",
            dimension_numbers=("NCHW", "OIHW", "NCHW"))
        y = y + b[None, :, None, None]
        mean = jnp.mean(y, axis=(2, 3), keepdims=True)
        var = jnp.mean((y - mean) ** 2, axis=(2, 3), keepdims=True)
        return (y - mean) * lax.rsqrt(var + EPS)

    h = jnp.maximum(conv_in(x, w1, b1), 0.0)
    h = conv_in(h, w2, b2)
    return x + h


if __name__ == "__main__":
    N, C, H, W = 2, 4, 16, 16

    key = jax.random.PRNGKey(0)
    kx, kw1, kb1, kw2, kb2 = jax.random.split(key, 5)
    x = jax.random.normal(kx, (N, C, H, W), dtype=jnp.float32)
    # Deterministic synthetic parameters (Conv2d(dim, dim, 3) shapes).
    w1 = jax.random.normal(kw1, (C, C, 3, 3), dtype=jnp.float32) * 0.1
    b1 = jax.random.normal(kb1, (C,), dtype=jnp.float32) * 0.1
    w2 = jax.random.normal(kw2, (C, C, 3, 3), dtype=jnp.float32) * 0.1
    b2 = jax.random.normal(kb2, (C,), dtype=jnp.float32) * 0.1

    out = jax.block_until_ready(residual_block_pallas(x, w1, b1, w2, b2))
    ref = _ref_residual_block(x, w1, b1, w2, b2)

    assert out.shape == (N, C, H, W)
    max_err = float(jnp.max(jnp.abs(out - ref)))
    # bf16 MXU operands loosen numerics vs the pure-f32 reference; the bias
    # terms cancel exactly under affine-less InstanceNorm, so dropping them
    # from the kernel does not change the result.
    assert jnp.allclose(out, ref, rtol=5e-2, atol=5e-2), (
        f"max abs err = {max_err}")

    print("KERNEL_OK")
</pallas_src>

<mosaic_0001>
module attributes {stable_mosaic.version = 11 : i64} {
  func.func @_residual_block_kernel(%arg0: i32, %arg1: memref<1x4x324xf32, #tpu.memory_space<vmem>>, %arg2: memref<9x4x4xbf16, #tpu.memory_space<vmem>>, %arg3: memref<9x4x4xbf16, #tpu.memory_space<vmem>>, %arg4: memref<1x324xi32, #tpu.memory_space<vmem>>, %arg5: memref<1x324xi32, #tpu.memory_space<vmem>>, %arg6: memref<1x4x288xf32, #tpu.memory_space<vmem>>, %arg7: memref<4x580xbf16, #tpu.memory_space<vmem>>) attributes {dimension_semantics = [#tpu.dimension_semantics<parallel>], iteration_bounds = array<i64: 2>, scalar_prefetch = 0 : i64, scratch_operands = 1 : i64, tpu.core_type = #tpu.core_type<tc>, window_params = [{transform_indices = @transform_0, window_bounds = array<i64: 1, 4, 324>}, {pipeline_mode = #tpu.pipeline_mode<synchronous>, transform_indices = @transform_1, window_bounds = array<i64: 9, 4, 4>}, {pipeline_mode = #tpu.pipeline_mode<synchronous>, transform_indices = @transform_2, window_bounds = array<i64: 9, 4, 4>}, {pipeline_mode = #tpu.pipeline_mode<synchronous>, transform_indices = @transform_3, window_bounds = array<i64: 1, 324>}, {pipeline_mode = #tpu.pipeline_mode<synchronous>, transform_indices = @transform_4, window_bounds = array<i64: 1, 324>}, {transform_indices = @transform_5, window_bounds = array<i64: 1, 4, 288>}]} {
    %c0 = arith.constant 0 : index
    %c0_0 = arith.constant 0 : index
    %0 = vector.load %arg4[%c0, %c0_0] : memref<1x324xi32, #tpu.memory_space<vmem>>, vector<1x324xi32>
    %c0_1 = arith.constant 0 : index
    %c0_2 = arith.constant 0 : index
    %1 = vector.load %arg5[%c0_1, %c0_2] : memref<1x324xi32, #tpu.memory_space<vmem>>, vector<1x324xi32>
    %c1_i32 = arith.constant 1 : i32
    %2 = vector.broadcast %c1_i32 : i32 to vector<1x324xi32>
    %3 = arith.cmpi sge, %0, %2 : vector<1x324xi32>
    %c16_i32 = arith.constant 16 : i32
    %4 = vector.broadcast %c16_i32 : i32 to vector<1x324xi32>
    %5 = arith.cmpi sle, %0, %4 : vector<1x324xi32>
    %6 = arith.andi %3, %5 : vector<1x324xi1>
    %c1_i32_3 = arith.constant 1 : i32
    %7 = vector.broadcast %c1_i32_3 : i32 to vector<1x324xi32>
    %8 = arith.cmpi sge, %1, %7 : vector<1x324xi32>
    %9 = arith.andi %6, %8 : vector<1x324xi1>
    %c16_i32_4 = arith.constant 16 : i32
    %10 = vector.broadcast %c16_i32_4 : i32 to vector<1x324xi32>
    %11 = arith.cmpi sle, %1, %10 : vector<1x324xi32>
    %12 = arith.andi %9, %11 : vector<1x324xi1>
    %cst = arith.constant 0.000000e+00 : bf16
    %13 = vector.broadcast %cst : bf16 to vector<4x128xbf16>
    %c0_5 = arith.constant 0 : index
    %c0_6 = arith.constant 0 : index
    %14 = vector.load %arg7[%c0_5, %c0_6] : memref<4x580xbf16, #tpu.memory_space<vmem>>, vector<4x128xbf16>
    tpu.vector_store %arg7[%c0_5, %c0_6], %13 {strides = array<i32>} : memref<4x580xbf16, #tpu.memory_space<vmem>>, vector<4x128xbf16>,
    %cst_7 = arith.constant 0.000000e+00 : bf16
    %15 = vector.broadcast %cst_7 : bf16 to vector<4x128xbf16>
    %c0_8 = arith.constant 0 : index
    %c452 = arith.constant 452 : index
    %16 = vector.load %arg7[%c0_8, %c452] : memref<4x580xbf16, #tpu.memory_space<vmem>>, vector<4x128xbf16>
    tpu.vector_store %arg7[%c0_8, %c452], %15 {strides = array<i32>} : memref<4x580xbf16, #tpu.memory_space<vmem>>, vector<4x128xbf16>,
    %c0_9 = arith.constant 0 : index
    %c0_10 = arith.constant 0 : index
    %c0_11 = arith.constant 0 : index
    %17 = vector.load %arg1[%c0_9, %c0_10, %c0_11] : memref<1x4x324xf32, #tpu.memory_space<vmem>>, vector<1x4x324xf32>
    %18 = vector.shape_cast %17 : vector<1x4x324xf32> to vector<4x324xf32>
    %19 = arith.truncf %18 : vector<4x324xf32> to vector<4x324xbf16>
    %c0_12 = arith.constant 0 : index
    %c128 = arith.constant 128 : index
    %20 = vector.load %arg7[%c0_12, %c128] : memref<4x580xbf16, #tpu.memory_space<vmem>>, vector<4x324xbf16>
    tpu.vector_store %arg7[%c0_12, %c128], %19 {strides = array<i32>} : memref<4x580xbf16, #tpu.memory_space<vmem>>, vector<4x324xbf16>,
    %cst_13 = arith.constant 0.000000e+00 : f32
    %21 = vector.broadcast %cst_13 : f32 to vector<4x324xf32>
    %c0_14 = arith.constant 0 : index
    %c0_15 = arith.constant 0 : index
    %c0_16 = arith.constant 0 : index
    %22 = vector.load %arg2[%c0_14, %c0_15, %c0_16] : memref<9x4x4xbf16, #tpu.memory_space<vmem>>, vector<1x4x4xbf16>
    %23 = vector.shape_cast %22 : vector<1x4x4xbf16> to vector<4x4xbf16>
    %c0_17 = arith.constant 0 : index
    %c109 = arith.constant 109 : index
    %24 = vector.load %arg7[%c0_17, %c109] : memref<4x580xbf16, #tpu.memory_space<vmem>>, vector<4x324xbf16>
    %cst_18 = arith.constant dense<0.000000e+00> : vector<4x324xf32>
    %25 = tpu.matmul %23, %24, %cst_18 {dimension_numbers = #tpu.dot_dimension_numbers<[1], [0], [0], [1], [0, 0, 1, 1], [], []>} : vector<4x4xbf16>, vector<4x324xbf16>, vector<4x324xf32> -> vector<4x324xf32>
    %26 = arith.addf %21, %25 : vector<4x324xf32>
    %c1 = arith.constant 1 : index
    %c0_19 = arith.constant 0 : index
    %c0_20 = arith.constant 0 : index
    %27 = vector.load %arg2[%c1, %c0_19, %c0_20] : memref<9x4x4xbf16, #tpu.memory_space<vmem>>, vector<1x4x4xbf16>
    %28 = vector.shape_cast %27 : vector<1x4x4xbf16> to vector<4x4xbf16>
    %c0_21 = arith.constant 0 : index
    %c110 = arith.constant 110 : index
    %29 = vector.load %arg7[%c0_21, %c110] : memref<4x580xbf16, #tpu.memory_space<vmem>>, vector<4x324xbf16>
    %cst_22 = arith.constant dense<0.000000e+00> : vector<4x324xf32>
    %30 = tpu.matmul %28, %29, %cst_22 {dimension_numbers = #tpu.dot_dimension_numbers<[1], [0], [0], [1], [0, 0, 1, 1], [], []>} : vector<4x4xbf16>, vector<4x324xbf16>, vector<4x324xf32> -> vector<4x324xf32>
    %31 = arith.addf %26, %30 : vector<4x324xf32>
    %c2 = arith.constant 2 : index
    %c0_23 = arith.constant 0 : index
    %c0_24 = arith.constant 0 : index
    %32 = vector.load %arg2[%c2, %c0_23, %c0_24] : memref<9x4x4xbf16, #tpu.memory_space<vmem>>, vector<1x4x4xbf16>
    %33 = vector.shape_cast %32 : vector<1x4x4xbf16> to vector<4x4xbf16>
    %c0_25 = arith.constant 0 : index
    %c111 = arith.constant 111 : index
    %34 = vector.load %arg7[%c0_25, %c111] : memref<4x580xbf16, #tpu.memory_space<vmem>>, vector<4x324xbf16>
    %cst_26 = arith.constant dense<0.000000e+00> : vector<4x324xf32>
    %35 = tpu.matmul %33, %34, %cst_26 {dimension_numbers = #tpu.dot_dimension_numbers<[1], [0], [0], [1], [0, 0, 1, 1], [], []>} : vector<4x4xbf16>, vector<4x324xbf16>, vector<4x324xf32> -> vector<4x324xf32>
    %36 = arith.addf %31, %35 : vector<4x324xf32>
    %c3 = arith.constant 3 : index
    %c0_27 = arith.constant 0 : index
    %c0_28 = arith.constant 0 : index
    %37 = vector.load %arg2[%c3, %c0_27, %c0_28] : memref<9x4x4xbf16, #tpu.memory_space<vmem>>, vector<1x4x4xbf16>
    %38 = vector.shape_cast %37 : vector<1x4x4xbf16> to vector<4x4xbf16>
    %c0_29 = arith.constant 0 : index
    %c127 = arith.constant 127 : index
    %39 = vector.load %arg7[%c0_29, %c127] : memref<4x580xbf16, #tpu.memory_space<vmem>>, vector<4x324xbf16>
    %cst_30 = arith.constant dense<0.000000e+00> : vector<4x324xf32>
    %40 = tpu.matmul %38, %39, %cst_30 {dimension_numbers = #tpu.dot_dimension_numbers<[1], [0], [0], [1], [0, 0, 1, 1], [], []>} : vector<4x4xbf16>, vector<4x324xbf16>, vector<4x324xf32> -> vector<4x324xf32>
    %41 = arith.addf %36, %40 : vector<4x324xf32>
    %c4 = arith.constant 4 : index
    %c0_31 = arith.constant 0 : index
    %c0_32 = arith.constant 0 : index
    %42 = vector.load %arg2[%c4, %c0_31, %c0_32] : memref<9x4x4xbf16, #tpu.memory_space<vmem>>, vector<1x4x4xbf16>
    %43 = vector.shape_cast %42 : vector<1x4x4xbf16> to vector<4x4xbf16>
    %c0_33 = arith.constant 0 : index
    %c128_34 = arith.constant 128 : index
    %44 = vector.load %arg7[%c0_33, %c128_34] : memref<4x580xbf16, #tpu.memory_space<vmem>>, vector<4x324xbf16>
    %cst_35 = arith.constant dense<0.000000e+00> : vector<4x324xf32>
    %45 = tpu.matmul %43, %44, %cst_35 {dimension_numbers = #tpu.dot_dimension_numbers<[1], [0], [0], [1], [0, 0, 1, 1], [], []>} : vector<4x4xbf16>, vector<4x324xbf16>, vector<4x324xf32> -> vector<4x324xf32>
    %46 = arith.addf %41, %45 : vector<4x324xf32>
    %c5 = arith.constant 5 : index
    %c0_36 = arith.constant 0 : index
    %c0_37 = arith.constant 0 : index
    %47 = vector.load %arg2[%c5, %c0_36, %c0_37] : memref<9x4x4xbf16, #tpu.memory_space<vmem>>, vector<1x4x4xbf16>
    %48 = vector.shape_cast %47 : vector<1x4x4xbf16> to vector<4x4xbf16>
    %c0_38 = arith.constant 0 : index
    %c129 = arith.constant 129 : index
    %49 = vector.load %arg7[%c0_38, %c129] : memref<4x580xbf16, #tpu.memory_space<vmem>>, vector<4x324xbf16>
    %cst_39 = arith.constant dense<0.000000e+00> : vector<4x324xf32>
    %50 = tpu.matmul %48, %49, %cst_39 {dimension_numbers = #tpu.dot_dimension_numbers<[1], [0], [0], [1], [0, 0, 1, 1], [], []>} : vector<4x4xbf16>, vector<4x324xbf16>, vector<4x324xf32> -> vector<4x324xf32>
    %51 = arith.addf %46, %50 : vector<4x324xf32>
    %c6 = arith.constant 6 : index
    %c0_40 = arith.constant 0 : index
    %c0_41 = arith.constant 0 : index
    %52 = vector.load %arg2[%c6, %c0_40, %c0_41] : memref<9x4x4xbf16, #tpu.memory_space<vmem>>, vector<1x4x4xbf16>
    %53 = vector.shape_cast %52 : vector<1x4x4xbf16> to vector<4x4xbf16>
    %c0_42 = arith.constant 0 : index
    %c145 = arith.constant 145 : index
    %54 = vector.load %arg7[%c0_42, %c145] : memref<4x580xbf16, #tpu.memory_space<vmem>>, vector<4x324xbf16>
    %cst_43 = arith.constant dense<0.000000e+00> : vector<4x324xf32>
    %55 = tpu.matmul %53, %54, %cst_43 {dimension_numbers = #tpu.dot_dimension_numbers<[1], [0], [0], [1], [0, 0, 1, 1], [], []>} : vector<4x4xbf16>, vector<4x324xbf16>, vector<4x324xf32> -> vector<4x324xf32>
    %56 = arith.addf %51, %55 : vector<4x324xf32>
    %c7 = arith.constant 7 : index
    %c0_44 = arith.constant 0 : index
    %c0_45 = arith.constant 0 : index
    %57 = vector.load %arg2[%c7, %c0_44, %c0_45] : memref<9x4x4xbf16, #tpu.memory_space<vmem>>, vector<1x4x4xbf16>
    %58 = vector.shape_cast %57 : vector<1x4x4xbf16> to vector<4x4xbf16>
    %c0_46 = arith.constant 0 : index
    %c146 = arith.constant 146 : index
    %59 = vector.load %arg7[%c0_46, %c146] : memref<4x580xbf16, #tpu.memory_space<vmem>>, vector<4x324xbf16>
    %cst_47 = arith.constant dense<0.000000e+00> : vector<4x324xf32>
    %60 = tpu.matmul %58, %59, %cst_47 {dimension_numbers = #tpu.dot_dimension_numbers<[1], [0], [0], [1], [0, 0, 1, 1], [], []>} : vector<4x4xbf16>, vector<4x324xbf16>, vector<4x324xf32> -> vector<4x324xf32>
    %61 = arith.addf %56, %60 : vector<4x324xf32>
    %c8 = arith.constant 8 : index
    %c0_48 = arith.constant 0 : index
    %c0_49 = arith.constant 0 : index
    %62 = vector.load %arg2[%c8, %c0_48, %c0_49] : memref<9x4x4xbf16, #tpu.memory_space<vmem>>, vector<1x4x4xbf16>
    %63 = vector.shape_cast %62 : vector<1x4x4xbf16> to vector<4x4xbf16>
    %c0_50 = arith.constant 0 : index
    %c147 = arith.constant 147 : index
    %64 = vector.load %arg7[%c0_50, %c147] : memref<4x580xbf16, #tpu.memory_space<vmem>>, vector<4x324xbf16>
    %cst_51 = arith.constant dense<0.000000e+00> : vector<4x324xf32>
    %65 = tpu.matmul %63, %64, %cst_51 {dimension_numbers = #tpu.dot_dimension_numbers<[1], [0], [0], [1], [0, 0, 1, 1], [], []>} : vector<4x4xbf16>, vector<4x324xbf16>, vector<4x324xf32> -> vector<4x324xf32>
    %66 = arith.addf %61, %65 : vector<4x324xf32>
    %cst_52 = arith.constant 0.000000e+00 : f32
    %67 = vector.shape_cast %12 : vector<1x324xi1> to vector<1x324xi1>
    %68 = vector.broadcast %67 : vector<1x324xi1> to vector<4x324xi1>
    %69 = vector.broadcast %cst_52 : f32 to vector<4x324xf32>
    %70 = arith.select %68, %66, %69 : vector<4x324xi1>, vector<4x324xf32>
    %cst_53 = arith.constant dense<0.000000e+00> : vector<4xf32>
    %71 = vector.multi_reduction <add>, %70, %cst_53 [1] : vector<4x324xf32> to vector<4xf32>
    %72 = vector.shape_cast %71 : vector<4xf32> to vector<4x1xf32>
    %cst_54 = arith.constant 3.906250e-03 : f32
    %73 = vector.broadcast %cst_54 : f32 to vector<4x1xf32>
    %74 = arith.mulf %72, %73 : vector<4x1xf32>
    %75 = vector.broadcast %74 : vector<4x1xf32> to vector<4x324xf32>
    %76 = arith.subf %66, %75 : vector<4x324xf32>
    %cst_55 = arith.constant 0.000000e+00 : f32
    %77 = vector.shape_cast %12 : vector<1x324xi1> to vector<1x324xi1>
    %78 = vector.broadcast %77 : vector<1x324xi1> to vector<4x324xi1>
    %79 = vector.broadcast %cst_55 : f32 to vector<4x324xf32>
    %80 = arith.select %78, %76, %79 : vector<4x324xi1>, vector<4x324xf32>
    %81 = arith.mulf %80, %80 : vector<4x324xf32>
    %cst_56 = arith.constant dense<0.000000e+00> : vector<4xf32>
    %82 = vector.multi_reduction <add>, %81, %cst_56 [1] : vector<4x324xf32> to vector<4xf32>
    %83 = vector.shape_cast %82 : vector<4xf32> to vector<4x1xf32>
    %cst_57 = arith.constant 3.906250e-03 : f32
    %84 = vector.broadcast %cst_57 : f32 to vector<4x1xf32>
    %85 = arith.mulf %83, %84 : vector<4x1xf32>
    %86 = vector.broadcast %74 : vector<4x1xf32> to vector<4x324xf32>
    %87 = arith.subf %66, %86 : vector<4x324xf32>
    %cst_58 = arith.constant 9.99999974E-6 : f32
    %88 = vector.broadcast %cst_58 : f32 to vector<4x1xf32>
    %89 = arith.addf %85, %88 : vector<4x1xf32>
    %90 = math.rsqrt %89 : vector<4x1xf32>
    %91 = vector.broadcast %90 : vector<4x1xf32> to vector<4x324xf32>
    %92 = arith.mulf %87, %91 : vector<4x324xf32>
    %cst_59 = arith.constant 0.000000e+00 : f32
    %93 = vector.broadcast %cst_59 : f32 to vector<4x324xf32>
    %94 = arith.maximumf %92, %93 : vector<4x324xf32>
    %95 = arith.truncf %94 : vector<4x324xf32> to vector<4x324xbf16>
    %c0_60 = arith.constant 0 : index
    %c128_61 = arith.constant 128 : index
    %96 = vector.load %arg7[%c0_60, %c128_61] : memref<4x580xbf16, #tpu.memory_space<vmem>>, vector<4x324xbf16>
    tpu.vector_store %arg7[%c0_60, %c128_61], %95 {strides = array<i32>} : memref<4x580xbf16, #tpu.memory_space<vmem>>, vector<4x324xbf16>,
    %c0_i32 = arith.constant 0 : i32
    %97 = vector.broadcast %c0_i32 : i32 to vector<1x324xi32>
    %98 = arith.cmpi eq, %1, %97 : vector<1x324xi32>
    %c0_62 = arith.constant 0 : index
    %c130 = arith.constant 130 : index
    %99 = vector.load %arg7[%c0_62, %c130] : memref<4x580xbf16, #tpu.memory_space<vmem>>, vector<4x324xbf16>
    %100 = arith.extf %99 : vector<4x324xbf16> to vector<4x324xf32>
    %101 = vector.shape_cast %98 : vector<1x324xi1> to vector<1x324xi1>
    %102 = vector.broadcast %101 : vector<1x324xi1> to vector<4x324xi1>
    %103 = arith.select %102, %100, %94 : vector<4x324xi1>, vector<4x324xf32>
    %c17_i32 = arith.constant 17 : i32
    %104 = vector.broadcast %c17_i32 : i32 to vector<1x324xi32>
    %105 = arith.cmpi eq, %1, %104 : vector<1x324xi32>
    %c0_63 = arith.constant 0 : index
    %c126 = arith.constant 126 : index
    %106 = vector.load %arg7[%c0_63, %c126] : memref<4x580xbf16, #tpu.memory_space<vmem>>, vector<4x324xbf16>
    %107 = arith.extf %106 : vector<4x324xbf16> to vector<4x324xf32>
    %108 = vector.shape_cast %105 : vector<1x324xi1> to vector<1x324xi1>
    %109 = vector.broadcast %108 : vector<1x324xi1> to vector<4x324xi1>
    %110 = arith.select %109, %107, %103 : vector<4x324xi1>, vector<4x324xf32>
    %c0_i32_64 = arith.constant 0 : i32
    %111 = vector.broadcast %c0_i32_64 : i32 to vector<1x324xi32>
    %112 = arith.cmpi eq, %0, %111 : vector<1x324xi32>
    %c0_65 = arith.constant 0 : index
    %c164 = arith.constant 164 : index
    %113 = vector.load %arg7[%c0_65, %c164] : memref<4x580xbf16, #tpu.memory_space<vmem>>, vector<4x324xbf16>
    %114 = arith.extf %113 : vector<4x324xbf16> to vector<4x324xf32>
    %115 = vector.shape_cast %112 : vector<1x324xi1> to vector<1x324xi1>
    %116 = vector.broadcast %115 : vector<1x324xi1> to vector<4x324xi1>
    %117 = arith.select %116, %114, %110 : vector<4x324xi1>, vector<4x324xf32>
    %c17_i32_66 = arith.constant 17 : i32
    %118 = vector.broadcast %c17_i32_66 : i32 to vector<1x324xi32>
    %119 = arith.cmpi eq, %0, %118 : vector<1x324xi32>
    %c0_67 = arith.constant 0 : index
    %c92 = arith.constant 92 : index
    %120 = vector.load %arg7[%c0_67, %c92] : memref<4x580xbf16, #tpu.memory_space<vmem>>, vector<4x324xbf16>
    %121 = arith.extf %120 : vector<4x324xbf16> to vector<4x324xf32>
    %122 = vector.shape_cast %119 : vector<1x324xi1> to vector<1x324xi1>
    %123 = vector.broadcast %122 : vector<1x324xi1> to vector<4x324xi1>
    %124 = arith.select %123, %121, %117 : vector<4x324xi1>, vector<4x324xf32>
    %c0_i32_68 = arith.constant 0 : i32
    %125 = vector.broadcast %c0_i32_68 : i32 to vector<1x324xi32>
    %126 = arith.cmpi eq, %0, %125 : vector<1x324xi32>
    %c0_i32_69 = arith.constant 0 : i32
    %127 = vector.broadcast %c0_i32_69 : i32 to vector<1x324xi32>
    %128 = arith.cmpi eq, %1, %127 : vector<1x324xi32>
    %129 = arith.andi %126, %128 : vector<1x324xi1>
    %c0_70 = arith.constant 0 : index
    %c166 = arith.constant 166 : index
    %130 = vector.load %arg7[%c0_70, %c166] : memref<4x580xbf16, #tpu.memory_space<vmem>>, vector<4x324xbf16>
    %131 = arith.extf %130 : vector<4x324xbf16> to vector<4x324xf32>
    %132 = vector.shape_cast %129 : vector<1x324xi1> to vector<1x324xi1>
    %133 = vector.broadcast %132 : vector<1x324xi1> to vector<4x324xi1>
    %134 = arith.select %133, %131, %124 : vector<4x324xi1>, vector<4x324xf32>
    %c0_i32_71 = arith.constant 0 : i32
    %135 = vector.broadcast %c0_i32_71 : i32 to vector<1x324xi32>
    %136 = arith.cmpi eq, %0, %135 : vector<1x324xi32>
    %c17_i32_72 = arith.constant 17 : i32
    %137 = vector.broadcast %c17_i32_72 : i32 to vector<1x324xi32>
    %138 = arith.cmpi eq, %1, %137 : vector<1x324xi32>
    %139 = arith.andi %136, %138 : vector<1x324xi1>
    %c0_73 = arith.constant 0 : index
    %c162 = arith.constant 162 : index
    %140 = vector.load %arg7[%c0_73, %c162] : memref<4x580xbf16, #tpu.memory_space<vmem>>, vector<4x324xbf16>
    %141 = arith.extf %140 : vector<4x324xbf16> to vector<4x324xf32>
    %142 = vector.shape_cast %139 : vector<1x324xi1> to vector<1x324xi1>
    %143 = vector.broadcast %142 : vector<1x324xi1> to vector<4x324xi1>
    %144 = arith.select %143, %141, %134 : vector<4x324xi1>, vector<4x324xf32>
    %c17_i32_74 = arith.constant 17 : i32
    %145 = vector.broadcast %c17_i32_74 : i32 to vector<1x324xi32>
    %146 = arith.cmpi eq, %0, %145 : vector<1x324xi32>
    %c0_i32_75 = arith.constant 0 : i32
    %147 = vector.broadcast %c0_i32_75 : i32 to vector<1x324xi32>
    %148 = arith.cmpi eq, %1, %147 : vector<1x324xi32>
    %149 = arith.andi %146, %148 : vector<1x324xi1>
    %c0_76 = arith.constant 0 : index
    %c94 = arith.constant 94 : index
    %150 = vector.load %arg7[%c0_76, %c94] : memref<4x580xbf16, #tpu.memory_space<vmem>>, vector<4x324xbf16>
    %151 = arith.extf %150 : vector<4x324xbf16> to vector<4x324xf32>
    %152 = vector.shape_cast %149 : vector<1x324xi1> to vector<1x324xi1>
    %153 = vector.broadcast %152 : vector<1x324xi1> to vector<4x324xi1>
    %154 = arith.select %153, %151, %144 : vector<4x324xi1>, vector<4x324xf32>
    %c17_i32_77 = arith.constant 17 : i32
    %155 = vector.broadcast %c17_i32_77 : i32 to vector<1x324xi32>
    %156 = arith.cmpi eq, %0, %155 : vector<1x324xi32>
    %c17_i32_78 = arith.constant 17 : i32
    %157 = vector.broadcast %c17_i32_78 : i32 to vector<1x324xi32>
    %158 = arith.cmpi eq, %1, %157 : vector<1x324xi32>
    %159 = arith.andi %156, %158 : vector<1x324xi1>
    %c0_79 = arith.constant 0 : index
    %c90 = arith.constant 90 : index
    %160 = vector.load %arg7[%c0_79, %c90] : memref<4x580xbf16, #tpu.memory_space<vmem>>, vector<4x324xbf16>
    %161 = arith.extf %160 : vector<4x324xbf16> to vector<4x324xf32>
    %162 = vector.shape_cast %159 : vector<1x324xi1> to vector<1x324xi1>
    %163 = vector.broadcast %162 : vector<1x324xi1> to vector<4x324xi1>
    %164 = arith.select %163, %161, %154 : vector<4x324xi1>, vector<4x324xf32>
    %165 = arith.truncf %164 : vector<4x324xf32> to vector<4x324xbf16>
    %c0_80 = arith.constant 0 : index
    %c128_81 = arith.constant 128 : index
    %166 = vector.load %arg7[%c0_80, %c128_81] : memref<4x580xbf16, #tpu.memory_space<vmem>>, vector<4x324xbf16>
    tpu.vector_store %arg7[%c0_80, %c128_81], %165 {strides = array<i32>} : memref<4x580xbf16, #tpu.memory_space<vmem>>, vector<4x324xbf16>,
    %cst_82 = arith.constant 0.000000e+00 : f32
    %167 = vector.broadcast %cst_82 : f32 to vector<4x324xf32>
    %c0_83 = arith.constant 0 : index
    %c0_84 = arith.constant 0 : index
    %c0_85 = arith.constant 0 : index
    %168 = vector.load %arg3[%c0_83, %c0_84, %c0_85] : memref<9x4x4xbf16, #tpu.memory_space<vmem>>, vector<1x4x4xbf16>
    %169 = vector.shape_cast %168 : vector<1x4x4xbf16> to vector<4x4xbf16>
    %c0_86 = arith.constant 0 : index
    %c109_87 = arith.constant 109 : index
    %170 = vector.load %arg7[%c0_86, %c109_87] : memref<4x580xbf16, #tpu.memory_space<vmem>>, vector<4x324xbf16>
    %cst_88 = arith.constant dense<0.000000e+00> : vector<4x324xf32>
    %171 = tpu.matmul %169, %170, %cst_88 {dimension_numbers = #tpu.dot_dimension_numbers<[1], [0], [0], [1], [0, 0, 1, 1], [], []>} : vector<4x4xbf16>, vector<4x324xbf16>, vector<4x324xf32> -> vector<4x324xf32>
    %172 = arith.addf %167, %171 : vector<4x324xf32>
    %c1_89 = arith.constant 1 : index
    %c0_90 = arith.constant 0 : index
    %c0_91 = arith.constant 0 : index
    %173 = vector.load %arg3[%c1_89, %c0_90, %c0_91] : memref<9x4x4xbf16, #tpu.memory_space<vmem>>, vector<1x4x4xbf16>
    %174 = vector.shape_cast %173 : vector<1x4x4xbf16> to vector<4x4xbf16>
    %c0_92 = arith.constant 0 : index
    %c110_93 = arith.constant 110 : index
    %175 = vector.load %arg7[%c0_92, %c110_93] : memref<4x580xbf16, #tpu.memory_space<vmem>>, vector<4x324xbf16>
    %cst_94 = arith.constant dense<0.000000e+00> : vector<4x324xf32>
    %176 = tpu.matmul %174, %175, %cst_94 {dimension_numbers = #tpu.dot_dimension_numbers<[1], [0], [0], [1], [0, 0, 1, 1], [], []>} : vector<4x4xbf16>, vector<4x324xbf16>, vector<4x324xf32> -> vector<4x324xf32>
    %177 = arith.addf %172, %176 : vector<4x324xf32>
    %c2_95 = arith.constant 2 : index
    %c0_96 = arith.constant 0 : index
    %c0_97 = arith.constant 0 : index
    %178 = vector.load %arg3[%c2_95, %c0_96, %c0_97] : memref<9x4x4xbf16, #tpu.memory_space<vmem>>, vector<1x4x4xbf16>
    %179 = vector.shape_cast %178 : vector<1x4x4xbf16> to vector<4x4xbf16>
    %c0_98 = arith.constant 0 : index
    %c111_99 = arith.constant 111 : index
    %180 = vector.load %arg7[%c0_98, %c111_99] : memref<4x580xbf16, #tpu.memory_space<vmem>>, vector<4x324xbf16>
    %cst_100 = arith.constant dense<0.000000e+00> : vector<4x324xf32>
    %181 = tpu.matmul %179, %180, %cst_100 {dimension_numbers = #tpu.dot_dimension_numbers<[1], [0], [0], [1], [0, 0, 1, 1], [], []>} : vector<4x4xbf16>, vector<4x324xbf16>, vector<4x324xf32> -> vector<4x324xf32>
    %182 = arith.addf %177, %181 : vector<4x324xf32>
    %c3_101 = arith.constant 3 : index
    %c0_102 = arith.constant 0 : index
    %c0_103 = arith.constant 0 : index
    %183 = vector.load %arg3[%c3_101, %c0_102, %c0_103] : memref<9x4x4xbf16, #tpu.memory_space<vmem>>, vector<1x4x4xbf16>
    %184 = vector.shape_cast %183 : vector<1x4x4xbf16> to vector<4x4xbf16>
    %c0_104 = arith.constant 0 : index
    %c127_105 = arith.constant 127 : index
    %185 = vector.load %arg7[%c0_104, %c127_105] : memref<4x580xbf16, #tpu.memory_space<vmem>>, vector<4x324xbf16>
    %cst_106 = arith.constant dense<0.000000e+00> : vector<4x324xf32>
    %186 = tpu.matmul %184, %185, %cst_106 {dimension_numbers = #tpu.dot_dimension_numbers<[1], [0], [0], [1], [0, 0, 1, 1], [], []>} : vector<4x4xbf16>, vector<4x324xbf16>, vector<4x324xf32> -> vector<4x324xf32>
    %187 = arith.addf %182, %186 : vector<4x324xf32>
    %c4_107 = arith.constant 4 : index
    %c0_108 = arith.constant 0 : index
    %c0_109 = arith.constant 0 : index
    %188 = vector.load %arg3[%c4_107, %c0_108, %c0_109] : memref<9x4x4xbf16, #tpu.memory_space<vmem>>, vector<1x4x4xbf16>
    %189 = vector.shape_cast %188 : vector<1x4x4xbf16> to vector<4x4xbf16>
    %c0_110 = arith.constant 0 : index
    %c128_111 = arith.constant 128 : index
    %190 = vector.load %arg7[%c0_110, %c128_111] : memref<4x580xbf16, #tpu.memory_space<vmem>>, vector<4x324xbf16>
    %cst_112 = arith.constant dense<0.000000e+00> : vector<4x324xf32>
    %191 = tpu.matmul %189, %190, %cst_112 {dimension_numbers = #tpu.dot_dimension_numbers<[1], [0], [0], [1], [0, 0, 1, 1], [], []>} : vector<4x4xbf16>, vector<4x324xbf16>, vector<4x324xf32> -> vector<4x324xf32>
    %192 = arith.addf %187, %191 : vector<4x324xf32>
    %c5_113 = arith.constant 5 : index
    %c0_114 = arith.constant 0 : index
    %c0_115 = arith.constant 0 : index
    %193 = vector.load %arg3[%c5_113, %c0_114, %c0_115] : memref<9x4x4xbf16, #tpu.memory_space<vmem>>, vector<1x4x4xbf16>
    %194 = vector.shape_cast %193 : vector<1x4x4xbf16> to vector<4x4xbf16>
    %c0_116 = arith.constant 0 : index
    %c129_117 = arith.constant 129 : index
    %195 = vector.load %arg7[%c0_116, %c129_117] : memref<4x580xbf16, #tpu.memory_space<vmem>>, vector<4x324xbf16>
    %cst_118 = arith.constant dense<0.000000e+00> : vector<4x324xf32>
    %196 = tpu.matmul %194, %195, %cst_118 {dimension_numbers = #tpu.dot_dimension_numbers<[1], [0], [0], [1], [0, 0, 1, 1], [], []>} : vector<4x4xbf16>, vector<4x324xbf16>, vector<4x324xf32> -> vector<4x324xf32>
    %197 = arith.addf %192, %196 : vector<4x324xf32>
    %c6_119 = arith.constant 6 : index
    %c0_120 = arith.constant 0 : index
    %c0_121 = arith.constant 0 : index
    %198 = vector.load %arg3[%c6_119, %c0_120, %c0_121] : memref<9x4x4xbf16, #tpu.memory_space<vmem>>, vector<1x4x4xbf16>
    %199 = vector.shape_cast %198 : vector<1x4x4xbf16> to vector<4x4xbf16>
    %c0_122 = arith.constant 0 : index
    %c145_123 = arith.constant 145 : index
    %200 = vector.load %arg7[%c0_122, %c145_123] : memref<4x580xbf16, #tpu.memory_space<vmem>>, vector<4x324xbf16>
    %cst_124 = arith.constant dense<0.000000e+00> : vector<4x324xf32>
    %201 = tpu.matmul %199, %200, %cst_124 {dimension_numbers = #tpu.dot_dimension_numbers<[1], [0], [0], [1], [0, 0, 1, 1], [], []>} : vector<4x4xbf16>, vector<4x324xbf16>, vector<4x324xf32> -> vector<4x324xf32>
    %202 = arith.addf %197, %201 : vector<4x324xf32>
    %c7_125 = arith.constant 7 : index
    %c0_126 = arith.constant 0 : index
    %c0_127 = arith.constant 0 : index
    %203 = vector.load %arg3[%c7_125, %c0_126, %c0_127] : memref<9x4x4xbf16, #tpu.memory_space<vmem>>, vector<1x4x4xbf16>
    %204 = vector.shape_cast %203 : vector<1x4x4xbf16> to vector<4x4xbf16>
    %c0_128 = arith.constant 0 : index
    %c146_129 = arith.constant 146 : index
    %205 = vector.load %arg7[%c0_128, %c146_129] : memref<4x580xbf16, #tpu.memory_space<vmem>>, vector<4x324xbf16>
    %cst_130 = arith.constant dense<0.000000e+00> : vector<4x324xf32>
    %206 = tpu.matmul %204, %205, %cst_130 {dimension_numbers = #tpu.dot_dimension_numbers<[1], [0], [0], [1], [0, 0, 1, 1], [], []>} : vector<4x4xbf16>, vector<4x324xbf16>, vector<4x324xf32> -> vector<4x324xf32>
    %207 = arith.addf %202, %206 : vector<4x324xf32>
    %c8_131 = arith.constant 8 : index
    %c0_132 = arith.constant 0 : index
    %c0_133 = arith.constant 0 : index
    %208 = vector.load %arg3[%c8_131, %c0_132, %c0_133] : memref<9x4x4xbf16, #tpu.memory_space<vmem>>, vector<1x4x4xbf16>
    %209 = vector.shape_cast %208 : vector<1x4x4xbf16> to vector<4x4xbf16>
    %c0_134 = arith.constant 0 : index
    %c147_135 = arith.constant 147 : index
    %210 = vector.load %arg7[%c0_134, %c147_135] : memref<4x580xbf16, #tpu.memory_space<vmem>>, vector<4x324xbf16>
    %cst_136 = arith.constant dense<0.000000e+00> : vector<4x324xf32>
    %211 = tpu.matmul %209, %210, %cst_136 {dimension_numbers = #tpu.dot_dimension_numbers<[1], [0], [0], [1], [0, 0, 1, 1], [], []>} : vector<4x4xbf16>, vector<4x324xbf16>, vector<4x324xf32> -> vector<4x324xf32>
    %212 = arith.addf %207, %211 : vector<4x324xf32>
    %cst_137 = arith.constant 0.000000e+00 : f32
    %213 = vector.shape_cast %12 : vector<1x324xi1> to vector<1x324xi1>
    %214 = vector.broadcast %213 : vector<1x324xi1> to vector<4x324xi1>
    %215 = vector.broadcast %cst_137 : f32 to vector<4x324xf32>
    %216 = arith.select %214, %212, %215 : vector<4x324xi1>, vector<4x324xf32>
    %cst_138 = arith.constant dense<0.000000e+00> : vector<4xf32>
    %217 = vector.multi_reduction <add>, %216, %cst_138 [1] : vector<4x324xf32> to vector<4xf32>
    %218 = vector.shape_cast %217 : vector<4xf32> to vector<4x1xf32>
    %cst_139 = arith.constant 3.906250e-03 : f32
    %219 = vector.broadcast %cst_139 : f32 to vector<4x1xf32>
    %220 = arith.mulf %218, %219 : vector<4x1xf32>
    %221 = vector.broadcast %220 : vector<4x1xf32> to vector<4x324xf32>
    %222 = arith.subf %212, %221 : vector<4x324xf32>
    %cst_140 = arith.constant 0.000000e+00 : f32
    %223 = vector.shape_cast %12 : vector<1x324xi1> to vector<1x324xi1>
    %224 = vector.broadcast %223 : vector<1x324xi1> to vector<4x324xi1>
    %225 = vector.broadcast %cst_140 : f32 to vector<4x324xf32>
    %226 = arith.select %224, %222, %225 : vector<4x324xi1>, vector<4x324xf32>
    %227 = arith.mulf %226, %226 : vector<4x324xf32>
    %cst_141 = arith.constant dense<0.000000e+00> : vector<4xf32>
    %228 = vector.multi_reduction <add>, %227, %cst_141 [1] : vector<4x324xf32> to vector<4xf32>
    %229 = vector.shape_cast %228 : vector<4xf32> to vector<4x1xf32>
    %cst_142 = arith.constant 3.906250e-03 : f32
    %230 = vector.broadcast %cst_142 : f32 to vector<4x1xf32>
    %231 = arith.mulf %229, %230 : vector<4x1xf32>
    %232 = vector.broadcast %220 : vector<4x1xf32> to vector<4x324xf32>
    %233 = arith.subf %212, %232 : vector<4x324xf32>
    %cst_143 = arith.constant 9.99999974E-6 : f32
    %234 = vector.broadcast %cst_143 : f32 to vector<4x1xf32>
    %235 = arith.addf %231, %234 : vector<4x1xf32>
    %236 = math.rsqrt %235 : vector<4x1xf32>
    %237 = vector.broadcast %236 : vector<4x1xf32> to vector<4x324xf32>
    %238 = arith.mulf %233, %237 : vector<4x324xf32>
    %c0_144 = arith.constant 0 : index
    %c0_145 = arith.constant 0 : index
    %c18 = arith.constant 18 : index
    %239 = vector.load %arg1[%c0_144, %c0_145, %c18] : memref<1x4x324xf32, #tpu.memory_space<vmem>>, vector<1x4x288xf32>
    %240 = vector.shape_cast %239 : vector<1x4x288xf32> to vector<4x288xf32>
    %241 = vector.extract_strided_slice %238 {offsets = [0, 18], sizes = [4, 288], strides = [1, 1]} : vector<4x324xf32> to vector<4x288xf32>
    %242 = arith.addf %240, %241 : vector<4x288xf32>
    %c0_146 = arith.constant 0 : index
    %c0_147 = arith.constant 0 : index
    %c0_148 = arith.constant 0 : index
    %243 = vector.load %arg6[%c0_146, %c0_147, %c0_148] : memref<1x4x288xf32, #tpu.memory_space<vmem>>, vector<1x4x288xf32>
    %244 = vector.shape_cast %243 : vector<1x4x288xf32> to vector<4x288xf32>
    %245 = vector.shape_cast %242 : vector<4x288xf32> to vector<1x4x288xf32>
    tpu.vector_store %arg6[%c0_146, %c0_147, %c0_148], %245 {strides = array<i32>} : memref<1x4x288xf32, #tpu.memory_space<vmem>>, vector<1x4x288xf32>,
    return
  }
  func.func @transform_0(%arg0: i32) -> (i32, i32, i32) {
    %c0_i32 = arith.constant 0 : i32
    %c0_i32_0 = arith.constant 0 : i32
    %c0_i32_1 = arith.constant 0 : i32
    return %arg0, %c0_i32, %c0_i32_0 : i32, i32, i32
  }
  func.func @transform_1(%arg0: i32) -> (i32, i32, i32) {
    %c0_i32 = arith.constant 0 : i32
    %c0_i32_0 = arith.constant 0 : i32
    %c0_i32_1 = arith.constant 0 : i32
    %c0_i32_2 = arith.constant 0 : i32
    return %c0_i32, %c0_i32_0, %c0_i32_1 : i32, i32, i32
  }
  func.func @transform_2(%arg0: i32) -> (i32, i32, i32) {
    %c0_i32 = arith.constant 0 : i32
    %c0_i32_0 = arith.constant 0 : i32
    %c0_i32_1 = arith.constant 0 : i32
    %c0_i32_2 = arith.constant 0 : i32
    return %c0_i32, %c0_i32_0, %c0_i32_1 : i32, i32, i32
  }
  func.func @transform_3(%arg0: i32) -> (i32, i32) {
    %c0_i32 = arith.constant 0 : i32
    %c0_i32_0 = arith.constant 0 : i32
    %c0_i32_1 = arith.constant 0 : i32
    return %c0_i32, %c0_i32_0 : i32, i32
  }
  func.func @transform_4(%arg0: i32) -> (i32, i32) {
    %c0_i32 = arith.constant 0 : i32
    %c0_i32_0 = arith.constant 0 : i32
    %c0_i32_1 = arith.constant 0 : i32
    return %c0_i32, %c0_i32_0 : i32, i32
  }
  func.func @transform_5(%arg0: i32) -> (i32, i32, i32) {
    %c0_i32 = arith.constant 0 : i32
    %c0_i32_0 = arith.constant 0 : i32
    %c0_i32_1 = arith.constant 0 : i32
    return %arg0, %c0_i32, %c0_i32_0 : i32, i32, i32
  }
}

</mosaic_0001>

<bundles_post_ra>
// kernel: tpu_custom_call.1
= control target key start
LH: loop header
LB: loop body
LE: loop exit
PB: predicated region body
PF: predicated region fallthrough
CT: control target
= control target key end

     0   :  { %10 = vsyncpa [#allocation4], 0  ;;  %s3147_s0 = inlined_call_operand.vmem [shape: f32[2,4,324], index: 0, kind: input, shape index: {}]   ;;  %s3148_s1 = inlined_call_operand.vmem [shape: bf16[9,4,4], index: 1, kind: input, shape index: {}]   ;;  %s3149_s2 = inlined_call_operand.vmem [shape: bf16[9,4,4], index: 2, kind: input, shape index: {}]   ;;  %s3150_s3 = inlined_call_operand.vmem [shape: s32[1,324], index: 3, kind: input, shape index: {}]   ;;  %s3151_s4 = inlined_call_operand.vmem [shape: s32[1,324], index: 4, kind: input, shape index: {}]   ;;  %s3152_s5 = inlined_call_operand.hbm [shape: f32[2,4,288], index: 5, kind: output, shape index: {}]  }
   0x1   :  { %12 = vsyncpa [#allocation4 + $0x1], 0  ;;  %s2419_s18 = smov 0   ;;  %s2421_s19 = smov 0  }
   0x2   :  { %s2423_s20 = smov 0   ;;  %s2425_s21 = smov 0  }
   0x3 LB: > { %s2440_s22 = sadd.s32 4294967295, %s2370_s21   ;;  %s2107_s23 = sadd.s32 4294967294, %s2370_s21   ;;  %s2370_s21 = sphi %s2425_s21, %s3342_s21   ;;  %s2366_s20 = sphi %s2423_s20, %s3341_s20   ;;  %s2362_s19 = sphi %s2421_s19, %s3340_s19   ;;  %s2358_s18 = sphi %s2419_s18, %s3339_s18  }
   0x4   : > { %s2444_s24 = sadd.s32 1, %s2370_s21   ;;  %s135_s25 = sadd.s32 1, %s2366_s20 }
   0x5   : > { %s132_s26 = ssub.s32 %s2370_s21, %s2444_s24  ;;  %p145_p0 = scmp.ne.s32.totalorder %s2366_s20, %s2362_s19 }
   0x6   : > { %p133_p1 = scmp.eq.s32.totalorder %s132_s26, 0  ;;  %p146_p2 = scmp.eq.s32.totalorder %s2440_s22, 1 }
   0x7   : > { %p151_p3 = scmp.ne.s32.totalorder %s2362_s19, %s2358_s18  ;;  %p152_p4 = scmp.eq.s32.totalorder %s2107_s23, 1 }
   0x8   : > { %s2455_s27 = scalar_select %p133_p1, %s2366_s20, %s135_s25  }
   0x9   : > { %p2457_p5 = por %p146_p2, %p145_p0  ;;  %p2461_p6 = por %p152_p4, %p151_p3 }
   0xa   : > { %p2110_p7 = scmp.ge.s32.totalorder %s2370_s21, 1  ;;  %p190_p8 = scmp.lt.s32.totalorder %s2370_s21, 3 }
   0xc   : > { %p191_p9 = pnand %p2110_p7, %p190_p8 }
   0xd   : > { %p218_p10 = scmp.lt.s32.totalorder (!%p191_p9), %s2440_s22, 1  ;;  %s2373_s10 = smov (!%p191_p9), 18  }
   0xe   : > { %194 = sbr.rel (%p191_p9) target bundleno = 1663 (0x67f), region = 40  ;;  %s2374_s11 = smov (!%p191_p9), 19  }
   0xf   : > { %s2375_s12 = smov (!%p191_p9), 17   ;;  %s2376_s13 = smov (!%p191_p9), 1  }
  0x10   : > { %s2377_s14 = smov (!%p191_p9), 127   ;;  %s2378_s15 = smov (!%p191_p9), 111  }
  0x11   : > { %s2379_s16 = smov (!%p191_p9), 110   ;;  %s2380_s17 = smov (!%p191_p9), 109  }
  0x12   : > { %s2381_s25 = smov (!%p191_p9), 126   ;;  %s2382_s26 = smov (!%p191_p9), 92  }
  0x13   : > { %vm234_vm0 = vcmask 1041952   ;;  %vm235_vm1 = vcmask 551938   ;;  %v2372_v0 = vmov 0   ;;  %s219_s30 = scalar_select %p218_p10, %s2440_s22, 1  ;;  %vm3165_vm3 = vcmask 1041408  }
  0x14   : > { %233 = vst [vmem:[#allocation2] sm:$0x3] %v2372_v0  ;;  %vm236_vm2 = vmor %vm235_vm1, %vm234_vm0  ;;  %vm269_vm4 = vcmask 1043458   ;;  %vm271_vm6 = vcmask 553988   ;;  %vm3164_vm7 = vcmask 1045508   ;;  %vm3163_vm8 = vcmask 1043456  }
  0x15   : > { %237 = vst.msk [vmem:[#allocation2 + $0x6] sm:$0xf] %vm236_vm2, %v2372_v0  ;;  %s2186_s6 = smul.u32 12, %s219_s30  ;;  %vm270_vm5 = vmor %vm269_vm4, %vm3165_vm3  ;;  %v3179_v12 = vmov 0  ;;  %vm3160_vm10 = vcmask 154624   ;;  %vm3161_vm11 = vcmask 31744  }
  0x16   : > { %vm2480_vm9 = vmor %vm271_vm6, %vm270_vm5  ;;  %v274_v56 = vld [vmem:[%s3148_s1] sm:$0x3]  ;;  %vm3162_vm12 = vcmask 146432   ;;  %vm3159_vm13 = vcmask 138240   ;;  %vm3158_vm14 = vcmask 7168   ;;  %vm3156_vm15 = vcmask 1039360  }
  0x17   : > { %s2474_s9 = scalar_lea.vmem %s3147_s0, %s2186_s6  ;;  %v3180_v12 = vsel %vm2480_vm9, 4294967295, %v3179_v12  ;;  %vm3155_vm0 = vcmask 908288   ;;  %vm3154_vm1 = vcmask 900096   ;;  %vm3153_vm2 = vcmask 891904   ;;  %s2383_s30 = smov 2  }
  0x18   : > { %v238_v1 = vld [vmem:[%s2474_s9] sm:$0xff]  ;;  %v239_v2 = vld [vmem:[%s2474_s9 + $0x8] sm:$0xf]  ;;  %s2384_s6 = smov 36   ;;  %s2385_s7 = smov 94  }
  0x19   : > { %242 = vst [vmem:[#allocation1] ss:$2 sm:$0xff] %v238_v1  ;;  %s2386_s8 = smov 90   ;;  %s2387_s23 = smov 34  }
  0x1a   : > { %244 = vst [vmem:[#allocation1 + $0x10] ss:$2 sm:$0xff] %v239_v2 }
  0x20   : > { %v245_v3 = vld.sshfl [vmem:[#allocation1] sm:$0xff pattern:$0x75316420]  ;;  %v246_v4 = vld.sshfl [vmem:[#allocation1 + $0x8] sm:$0xff pattern:$0x75316420] }
  0x21   : > { %v247_v5 = vld.sshfl [vmem:[#allocation1 + $0x10] sm:$0xff pattern:$0x75316420]  ;;  %v251_v6 = vpack.c.bf16 %v246_v4, %v245_v3 }
  0x22   : > { %v252_v7 = vpack.c.bf16 %v247_v5, %v247_v5 }
  0x23   : > { %v255_v8 = vrot.slane %v251_v6, 2 }
  0x24   : > { %v256_v9 = vrot.slane %v252_v7, 4  ;;  %v257_v10 = vrot.slane %v252_v7, 6  ;;  %v2112_v7 = vld [vmem:[%s3148_s1 + $0x2] sm:$0x3] }
  0x25   : > { %v261_v11 = vsel %vm3165_vm3, %v251_v6, %v255_v8 }
  0x26   : > { %v265_v13 = vsel %vm3164_vm7, %v256_v9, %v257_v10 }
  0x27   : > { %v267_v14 = vsel %vm3163_vm8, %v261_v11, %v265_v13 }
  0x28   : > { %273 = vst.msk [vmem:[#allocation2 + $0x2] sm:$0x3f] %vm2480_vm9, %v267_v14 }
  0x2f   : > { %v275_v15 = vld [vmem:[#allocation2] sm:$0xff] }
  0x30   : > { %279 = vst [vmem:[#allocation1] ss:$4 sm:$0xff] %v275_v15  ;;  %v584_v28 = vld [vmem:[#allocation2 + $0x2] sm:$0x3f] }
  0x31   : > { %v643_v33 = vld [vmem:[#allocation2 + $0x2] sm:$0x3f] }
  0x32   : > { %v717_v37 = vld [vmem:[#allocation2 + $0x2] sm:$0x3f] }
  0x33   : > { %v791_v41 = vld [vmem:[#allocation2 + $0x2] sm:$0x3f] }
  0x34   : > { %v865_v45 = vld [vmem:[#allocation2 + $0x2] sm:$0x3f] }
  0x37   : > { %v284_v16 = vld.sshfl [vmem:[#allocation1 + $0x10] sm:$0xff pattern:$0x73625140]  ;;  %v280_v17 = vld.sshfl [vmem:[#allocation1] sm:$0xff pattern:$0x73625140] }
  0x38   : > { %292 = vrot.lane.b32.xlu0 %v284_v16, %s2373_s10  ;;  %288 = vrot.lane.b32.xlu1 %v280_v17, %s2373_s10  ;;  %v286_v18 = vld.sshfl [vmem:[#allocation1 + $0x18] sm:$0xff pattern:$0x73625140]  ;;  %v282_v19 = vld.sshfl [vmem:[#allocation1 + $0x8] sm:$0xff pattern:$0x73625140] }
  0x39   : > { %352 = vst [vmem:[#allocation1] ss:$4 sm:$0xff] %v275_v15 }
  0x40   : > { %294 = vrot.lane.b32.xlu0 %v286_v18, %s2373_s10  ;;  %290 = vrot.lane.b32.xlu1 %v282_v19, %s2373_s10  ;;  %v353_v20 = vld.sshfl [vmem:[#allocation1] sm:$0xff pattern:$0x73625140]  ;;  %v355_v21 = vld.sshfl [vmem:[#allocation1 + $0x8] sm:$0xff pattern:$0x73625140] }
  0x41   : > { %v357_v22 = vld.sshfl [vmem:[#allocation1 + $0x10] sm:$0xff pattern:$0x73625140]  ;;  %v359_v23 = vld.sshfl [vmem:[#allocation1 + $0x18] sm:$0xff pattern:$0x73625140]  ;;  %361 = vrot.lane.b32.xlu2 %v353_v20, %s2374_s11 }
  0x42   : > { %428 = vst [vmem:[#allocation1] ss:$4 sm:$0xff] %v275_v15 }
  0x49   : > { %v431_v24 = vld.sshfl [vmem:[#allocation1 + $0x8] sm:$0xff pattern:$0x73625140]  ;;  %v435_v25 = vld.sshfl [vmem:[#allocation1 + $0x18] sm:$0xff pattern:$0x73625140]  ;;  %363 = vrot.lane.b32.xlu2 %v355_v21, %s2374_s11 }
  0x4a   : > { %439 = vrot.lane.b32.xlu1 %v431_v24, %s2375_s12  ;;  %v429_v26 = vld.sshfl [vmem:[#allocation1] sm:$0xff pattern:$0x73625140]  ;;  %v433_v27 = vld.sshfl [vmem:[#allocation1 + $0x10] sm:$0xff pattern:$0x73625140] }
  0x4b   : > { %437 = vrot.lane.b32.xlu0 %v429_v26, %s2375_s12  ;;  %507 = vst [vmem:[#allocation1] ss:$4 sm:$0xff] %v275_v15  ;;  %v2119_v21 = vld [vmem:[%s3148_s1 + $0x4] sm:$0x3] }
  0x51   : > { %365 = vrot.lane.b32.xlu2 %v357_v22, %s2374_s11 }
  0x52   : > { %441 = vrot.lane.b32.xlu1 %v433_v27, %s2375_s12  ;;  %v512_v29 = vld.sshfl [vmem:[#allocation1 + $0x10] sm:$0xff pattern:$0x73625140]  ;;  %v508_v30 = vld.sshfl [vmem:[#allocation1] sm:$0xff pattern:$0x73625140] }
  0x53   : > { %367 = vrot.lane.b32.xlu0 %v359_v23, %s2374_s11  ;;  %v514_v31 = vld.sshfl [vmem:[#allocation1 + $0x18] sm:$0xff pattern:$0x73625140]  ;;  %v510_v32 = vld.sshfl [vmem:[#allocation1 + $0x8] sm:$0xff pattern:$0x73625140] }
  0x54   : > { %586 = vst [vmem:[#allocation1] ss:$4 sm:$0xff] %v584_v28 }
  0x59   : > { %518 = vrot.lane.b32.xlu2 %v510_v32, %s2376_s13 }
  0x5a   : > { %443 = vrot.lane.b32.xlu1 %v435_v25, %s2375_s12 }
  0x5b   : > { %520 = vrot.lane.b32.xlu0 %v512_v29, %s2376_s13  ;;  %v2502_v34 = vld.sshfl [vmem:[#allocation1] sm:$0xff pattern:$0x73625140]  ;;  %v2504_v35 = vld.sshfl [vmem:[#allocation1 + $0x8] sm:$0xff pattern:$0x73625140] }
  0x5c   : > { %v2506_v36 = vld.sshfl [vmem:[#allocation1 + $0x10] sm:$0xff pattern:$0x73625140]  ;;  %v595_v25 = vsel %vm3165_vm3, %v2504_v35, 0  ;;  %v593_v29 = vsel %vm3165_vm3, %v2502_v34, 0 }
  0x5d   : > { %645 = vst [vmem:[#allocation1] ss:$4 sm:$0xff] %v643_v33  ;;  %v597_v32 = vsel %vm3165_vm3, %v2506_v36, 0 }
  0x61   : > { %516 = vrot.lane.b32.xlu2 %v508_v30, %s2376_s13 }
  0x63   : > { %522 = vrot.lane.b32.xlu0 %v514_v31, %s2376_s13 }
  0x64   : > { %v646_v38 = vld.sshfl [vmem:[#allocation1] sm:$0xff pattern:$0x73625140]  ;;  %v648_v39 = vld.sshfl [vmem:[#allocation1 + $0x8] sm:$0xff pattern:$0x73625140] }
  0x65   : > { %v650_v40 = vld.sshfl [vmem:[#allocation1 + $0x10] sm:$0xff pattern:$0x73625140]  ;;  %652 = vrot.lane.b32.xlu1 %v646_v38, %s2377_s14 }
  0x66   : > { %719 = vst [vmem:[#allocation1] ss:$4 sm:$0xff] %v717_v37 }
  0x69   : > { %654 = vrot.lane.b32.xlu2 %v648_v39, %s2377_s14  ;;  %v2123_v39 = vld [vmem:[%s3148_s1 + $0x6] sm:$0x3] }
  0x6d   : > { %v720_v42 = vld.sshfl [vmem:[#allocation1] sm:$0xff pattern:$0x73625140]  ;;  %v722_v43 = vld.sshfl [vmem:[#allocation1 + $0x8] sm:$0xff pattern:$0x73625140] }
  0x6e   : > { %726 = vrot.lane.b32.xlu0 %v720_v42, %s2378_s15  ;;  %728 = vrot.lane.b32.xlu1 %v722_v43, %s2378_s15  ;;  %v724_v44 = vld.sshfl [vmem:[#allocation1 + $0x10] sm:$0xff pattern:$0x73625140] }
  0x6f   : > { %793 = vst [vmem:[#allocation1] ss:$4 sm:$0xff] %v791_v41 }
  0x71   : > { %656 = vrot.lane.b32.xlu2 %v650_v40, %s2377_s14 }
  0x76   : > { %730 = vrot.lane.b32.xlu0 %v724_v44, %s2378_s15  ;;  %v796_v46 = vld.sshfl [vmem:[#allocation1 + $0x8] sm:$0xff pattern:$0x73625140]  ;;  %v798_v47 = vld.sshfl [vmem:[#allocation1 + $0x10] sm:$0xff pattern:$0x73625140] }
  0x77   : > { %802 = vrot.lane.b32.xlu1 %v796_v46, %s2379_s16  ;;  %v794_v48 = vld.sshfl [vmem:[#allocation1] sm:$0xff pattern:$0x73625140] }
  0x78   : > { %867 = vst [vmem:[#allocation1] ss:$4 sm:$0xff] %v865_v45 }
  0x79   : > { %804 = vrot.lane.b32.xlu2 %v798_v47, %s2379_s16 }
  0x7e   : > { %800 = vrot.lane.b32.xlu0 %v794_v48, %s2379_s16 }
  0x7f   : > { %v872_v49 = vld.sshfl [vmem:[#allocation1 + $0x10] sm:$0xff pattern:$0x73625140]  ;;  %v870_v50 = vld.sshfl [vmem:[#allocation1 + $0x8] sm:$0xff pattern:$0x73625140] }
  0x80   : > { %878 = vrot.lane.b32.xlu1 %v872_v49, %s2380_s17  ;;  %v868_v51 = vld.sshfl [vmem:[#allocation1] sm:$0xff pattern:$0x73625140]  ;;  %v2127_v49 = vld [vmem:[%s3148_s1 + $0x8] sm:$0x3] }
  0x81   : > { %874 = vrot.lane.b32.xlu2 %v868_v51, %s2380_s17  ;;  %v2131_v51 = vld [vmem:[%s3148_s1 + $0xa] sm:$0x3] }
  0x86   : > { %876 = vrot.lane.b32.xlu0 %v870_v50, %s2380_s17 }
  0x9b   : > { %v362_v52 = vpop.permute.xlu2 %361 }
  0xa3   : > { %v364_v53 = vpop.permute.xlu2 %363 }
  0xa4   : > { %v370_v54 = vsel %vm3160_vm10, %v362_v52, %v364_v53 }
  0xa5   : > { %v377_v55 = vsel %vm3165_vm3, %v370_v54, 0 }
  0xa6   : > { %392 = vmatpush.bf16.msra.mxu3 %v377_v55 }
  0xa9   : > { %2116 = vmatmul.msk.bf16.vlgmr.msra.gmra.mxu3 %vm3161_vm11, %v274_v56 }
  0xaa   : > { %v293_v57 = vpop.permute.xlu0 %292  ;;  %v289_v58 = vpop.permute.xlu1 %288 }
  0xab   : > { %v366_v59 = vpop.permute.xlu2 %365 }
  0xac   : > { %v371_v60 = vsel %vm3160_vm10, %v364_v53, %v366_v59 }
  0xad   : > { %v380_v3 = vsel %vm3165_vm3, %v371_v60, 0 }
  0xb2   : > { %v295_v61 = vpop.permute.xlu0 %294  ;;  %v291_v62 = vpop.permute.xlu1 %290 }
  0xb3   : > { %v297_v63 = vsel %vm3162_vm12, %v289_v58, %v291_v62  ;;  %v298_v1 = vsel %vm3162_vm12, %v291_v62, %v293_v57  ;;  %v299_v2 = vsel %vm3162_vm12, %v293_v57, %v295_v61  ;;  %v519_v8 = vpop.permute.xlu2 %518 }
  0xb4   : > { %v305_v4 = vsel %vm3165_vm3, %v297_v63, 0  ;;  %v308_v5 = vsel %vm3165_vm3, %v298_v1, 0  ;;  %v311_v6 = vsel %vm3165_vm3, %v299_v2, 0  ;;  %v2135_v1 = vld [vmem:[%s3148_s1 + $0xc] sm:$0x3] }
  0xb5   : > { %320 = vmatpush.bf16.msra.mxu0 %v305_v4  ;;  %333 = vmatpush.bf16.msra.mxu1 %v308_v5 }
  0xb6   : > { %346 = vmatpush.bf16.msra.mxu2 %v311_v6 }
  0xb8   : > { %2113 = vmatmul.msk.bf16.vlgmr.msra.gmra.mxu0 %vm3161_vm11, %v2112_v7  ;;  %2114 = vmatmul.msk.bf16.vlgmr.msra.gmra.mxu1 %vm3161_vm11, %v2112_v7 }
  0xb9   : > { %405 = vmatpush.bf16.msrb.mxu0 %v380_v3  ;;  %2115 = vmatmul.msk.bf16.vlgmr.msra.gmra.mxu2 %vm3161_vm11, %v2112_v7 }
  0xbb   : > { %v517_v14 = vpop.permute.xlu2 %516 }
  0xbc   : > { %v440_v9 = vpop.permute.xlu1 %439  ;;  %v525_v15 = vsel %vm3158_vm14, %v517_v14, %v519_v8 }
  0xbd   : > { %v438_v10 = vpop.permute.xlu0 %437  ;;  %v532_v22 = vsel %vm3165_vm3, %v525_v15, 0 }
  0xbe   : > { %v446_v11 = vsel %vm3159_vm13, %v438_v10, %v440_v9  ;;  %v2143_v10 = vld [vmem:[%s3148_s1 + $0x10] sm:$0x3] }
  0xbf   : > { %v453_v13 = vsel %vm3165_vm3, %v446_v11, 0 }
  0xc0   : > { %468 = vmatpush.bf16.msrb.mxu2 %v453_v13 }
  0xc3   : > { %v655_v24 = vpop.permute.xlu2 %654 }
  0xc4   : > { %v442_v16 = vpop.permute.xlu1 %441 }
  0xc5   : > { %v368_v17 = vpop.permute.xlu0 %367  ;;  %v447_v18 = vsel %vm3159_vm13, %v440_v9, %v442_v16  ;;  %v2139_v9 = vld [vmem:[%s3148_s1 + $0xe] sm:$0x3] }
  0xc6   : > { %v372_v19 = vsel %vm3160_vm10, %v366_v59, %v368_v17  ;;  %v456_v20 = vsel %vm3165_vm3, %v447_v18, 0 }
  0xc7   : > { %v383_v23 = vsel %vm3165_vm3, %v372_v19, 0  ;;  %481 = vmatpush.bf16.msrb.mxu3 %v456_v20 }
  0xc8   : > { %418 = vmatpush.bf16.msrb.mxu1 %v383_v23  ;;  %2117 = vmatmul.msk.bf16.vlgmr.msrb.gmra.mxu0 %vm3161_vm11, %v274_v56 }
  0xc9   : > { %2120 = vmatmul.msk.bf16.vlgmr.msrb.gmra.mxu2 %vm3161_vm11, %v2119_v21 }
  0xca   : > { %2121 = vmatmul.msk.bf16.vlgmr.msrb.gmra.mxu3 %vm3161_vm11, %v2119_v21 }
  0xcb   : > { %2118 = vmatmul.msk.bf16.vlgmr.msrb.gmra.mxu1 %vm3161_vm11, %v274_v56  ;;  %v657_v35 = vpop.permute.xlu2 %656 }
  0xcc   : > { %547 = vmatpush.bf16.msra.mxu1 %v532_v22  ;;  %v444_v26 = vpop.permute.xlu1 %443  ;;  %v660_v37 = vsel %vm3156_vm15, %v655_v24, %v657_v35  ;;  %v671_v44 = vsel %vm3165_vm3, %v657_v35, 0 }
  0xcd   : > { %v521_v27 = vpop.permute.xlu0 %520  ;;  %v448_v28 = vsel %vm3159_vm13, %v442_v16, %v444_v26  ;;  %v668_v40 = vsel %vm3165_vm3, %v660_v37, 0 }
  0xce   : > { %v526_v30 = vsel %vm3158_vm14, %v519_v8, %v521_v27  ;;  %v459_v31 = vsel %vm3165_vm3, %v448_v28, 0 }
  0xcf   : > { %v535_v33 = vsel %vm3165_vm3, %v526_v30, 0  ;;  %494 = vmatpush.bf16.msra.mxu0 %v459_v31 }
  0xd0   : > { %619 = vmatpush.bf16.msrb.mxu1 %v595_v25  ;;  %560 = vmatpush.bf16.msra.mxu2 %v535_v33 }
  0xd3   : > { %606 = vmatpush.bf16.msrb.mxu0 %v593_v29  ;;  %v805_v50 = vpop.permute.xlu2 %804 }
  0xd4   : > { %632 = vmatpush.bf16.msrb.mxu2 %v597_v32  ;;  %v819_v57 = vsel %vm3165_vm3, %v805_v50, 0 }
  0xd5   : > { %v523_v38 = vpop.permute.xlu0 %522 }
  0xd6   : > { %v527_v34 = vsel %vm3158_vm14, %v521_v27, %v523_v38  ;;  %vm3166_vm14 = vcmask 1031168  }
  0xd7   : > { %v538_v36 = vsel %vm3165_vm3, %v527_v34, 0  ;;  %v653_v41 = vpop.permute.xlu1 %652 }
  0xd8   : > { %573 = vmatpush.bf16.msra.mxu3 %v538_v36  ;;  %2122 = vmatmul.msk.bf16.vlgmr.msra.gmra.mxu0 %vm3161_vm11, %v2119_v21  ;;  %v659_v42 = vsel %vm3156_vm15, %v653_v41, %v655_v24 }
  0xd9   : > { %2125 = vmatmul.msk.bf16.vlgmr.msra.gmra.mxu2 %vm3161_vm11, %v2123_v39  ;;  %v665_v43 = vsel %vm3165_vm3, %v659_v42, 0  ;;  %693 = vmatpush.bf16.msra.mxu0 %v668_v40 }
  0xdb   : > { %2124 = vmatmul.msk.bf16.vlgmr.msra.gmra.mxu1 %vm3161_vm11, %v2123_v39  ;;  %2126 = vmatmul.msk.bf16.vlgmr.msra.gmra.mxu3 %vm3161_vm11, %v2123_v39  ;;  %v875_v2 = vpop.permute.xlu2 %874 }
  0xdc   : > { %680 = vmatpush.bf16.msrb.mxu3 %v665_v43  ;;  %706 = vmatpush.bf16.msra.mxu1 %v671_v44 }
  0xe0   : > { %v727_v45 = vpop.permute.xlu0 %726  ;;  %v729_v46 = vpop.permute.xlu1 %728 }
  0xe1   : > { %v733_v47 = vsel %vm3155_vm0, %v727_v45, %v729_v46 }
  0xe2   : > { %v739_v48 = vsel %vm3165_vm3, %v733_v47, 0 }
  0xe3   : > { %754 = vmatpush.bf16.msra.mxu2 %v739_v48 }
  0xe8   : > { %2128 = vmatmul.msk.bf16.vlgmr.msrb.gmra.mxu0 %vm3161_vm11, %v2127_v49  ;;  %v731_v52 = vpop.permute.xlu0 %730 }
  0xe9   : > { %2130 = vmatmul.msk.bf16.vlgmr.msrb.gmra.mxu2 %vm3161_vm11, %v2127_v49  ;;  %v734_v53 = vsel %vm3155_vm0, %v729_v46, %v731_v52  ;;  %v745_v54 = vsel %vm3165_vm3, %v731_v52, 0  ;;  %v803_v55 = vpop.permute.xlu1 %802 }
  0xea   : > { %v742_v56 = vsel %vm3165_vm3, %v734_v53, 0  ;;  %780 = vmatpush.bf16.msrb.mxu0 %v745_v54  ;;  %v808_v58 = vsel %vm3154_vm1, %v803_v55, %v805_v50 }
  0xeb   : > { %2129 = vmatmul.msk.bf16.vlgmr.msrb.gmra.mxu1 %vm3161_vm11, %v2127_v49  ;;  %2132 = vmatmul.msk.bf16.vlgmr.msrb.gmra.mxu3 %vm3161_vm11, %v2131_v51  ;;  %v816_v59 = vsel %vm3165_vm3, %v808_v58, 0 }
  0xec   : > { %767 = vmatpush.bf16.msra.mxu3 %v742_v56  ;;  %841 = vmatpush.bf16.msrb.mxu2 %v816_v59  ;;  %v2634_v56 = vld [vmem:[%s3151_s4] sm:$0x7] }
  0xed   : > { %vm231_vm0 = vcmp.le.s32.totalorder %v2634_v56, 16 }
  0xf0   : > { %854 = vmatpush.bf16.msrb.mxu3 %v819_v57  ;;  %v801_v60 = vpop.permute.xlu0 %800 }
  0xf1   : > { %v807_v61 = vsel %vm3154_vm1, %v801_v60, %v803_v55  ;;  %v2629_v55 = vld [vmem:[%s3150_s3] sm:$0x7] }
  0xf2   : > { %v813_v62 = vsel %vm3165_vm3, %v807_v61, 0  ;;  %v879_v63 = vpop.permute.xlu1 %878  ;;  %vm226_vm4 = vcmp.ge.s32.totalorder %v2629_v55, 1  ;;  %vm227_vm5 = vcmp.le.s32.totalorder %v2629_v55, 16 }
  0xf3   : > { %828 = vmatpush.bf16.msrb.mxu1 %v813_v62  ;;  %v893_v3 = vsel %vm3165_vm3, %v879_v63, 0  ;;  %vm228_vm6 = vmand %vm226_vm4, %vm227_vm5 }
  0xf8   : > { %2133 = vmatmul.msk.bf16.vlgmr.msra.gmra.mxu0 %vm3161_vm11, %v2131_v51  ;;  %v877_v4 = vpop.permute.xlu0 %876 }
  0xf9   : > { %2136 = vmatmul.msk.bf16.vlgmr.msra.gmra.mxu2 %vm3161_vm11, %v2135_v1  ;;  %v882_v5 = vsel %vm3153_vm2, %v877_v4, %v879_v63  ;;  %v881_v6 = vsel %vm3153_vm2, %v875_v2, %v877_v4  ;;  %vm229_vm2 = vcmp.ge.s32.totalorder %v2634_v56, 1 }
  0xfa   : > { %v890_v7 = vsel %vm3165_vm3, %v882_v5, 0  ;;  %v887_v8 = vsel %vm3165_vm3, %v881_v6, 0  ;;  %928 = vmatpush.bf16.msra.mxu2 %v893_v3  ;;  %vm230_vm1 = vmand %vm228_vm6, %vm229_vm2  ;;  %vm3157_vm2 = vcmask 551936  }
  0xfb   : > { %2134 = vmatmul.msk.bf16.vlgmr.msra.gmra.mxu1 %vm3161_vm11, %v2131_v51  ;;  %2137 = vmatmul.msk.bf16.vlgmr.msra.gmra.mxu3 %vm3161_vm11, %v2135_v1  ;;  %vm232_vm15 = vmand %vm230_vm1, %vm231_vm0 }
  0xfc   : > { %902 = vmatpush.bf16.msra.mxu0 %v887_v8  ;;  %915 = vmatpush.bf16.msra.mxu1 %v890_v7  ;;  %v937_v4 = vsel %vm232_vm15, 1, %v2372_v0 }
 0x108   : > { %2138 = vmatmul.msk.bf16.vlgmr.msrb.gmra.mxu0 %vm3161_vm11, %v2135_v1 }
 0x109   : > { %2141 = vmatmul.msk.bf16.vlgmr.msrb.gmra.mxu2 %vm3161_vm11, %v2139_v9 }
 0x10b   : > { %2140 = vmatmul.msk.bf16.vlgmr.msrb.gmra.mxu1 %vm3161_vm11, %v2139_v9  ;;  %2142 = vmatmul.msk.bf16.vlgmr.msrb.gmra.mxu3 %vm3161_vm11, %v2139_v9 }
 0x118   : > { %2144 = vmatmul.msk.bf16.vlgmr.msra.gmra.mxu0 %vm3161_vm11, %v2143_v10 }
 0x119   : > { %2146 = vmatmul.msk.bf16.vlgmr.msra.gmra.mxu2 %vm3161_vm11, %v2143_v10 }
 0x11b   : > { %2145 = vmatmul.msk.bf16.vlgmr.msra.gmra.mxu1 %vm3161_vm11, %v2143_v10  ;;  %v938_v10 = vperm.slane %v937_v4, 0 }
 0x11d   : > { %vm2641_vm0 = vcmp.eq.s32.totalorder %v938_v10, 1 }
 0x12c   : > { %v394_v11 = vpop.f32.mrf.mxu3 }
 0x134   : > { %v396_v13 = vpop.f32.mrf.mxu3 }
 0x135   : > { %v322_v14 = vpop.f32.mrf.mxu0  ;;  %v335_v15 = vpop.f32.mrf.mxu1 }
 0x136   : > { %v395_v16 = vadd.f32 %v394_v11, %v322_v14 }
 0x13c   : > { %v348_v17 = vpop.f32.mrf.mxu2 }
 0x13d   : > { %v324_v18 = vpop.f32.mrf.mxu0  ;;  %v337_v19 = vpop.f32.mrf.mxu1 }
 0x144   : > { %v350_v20 = vpop.f32.mrf.mxu2 }
 0x145   : > { %v407_v21 = vpop.f32.mrf.mxu0 }
 0x146   : > { %v408_v22 = vadd.f32 %v407_v21, %v335_v15  ;;  %v3181_v21 = vmov 0 }
 0x147   : > { %v3182_v21 = vsel %vm2641_vm0, 4294967295, %v3181_v21 }
 0x148   : > { %v420_v23 = vpop.f32.mrf.mxu1 }
 0x149   : > { %v421_v24 = vadd.f32 %v420_v23, %v348_v17 }
 0x14c   : > { %v470_v25 = vpop.f32.mrf.mxu2 }
 0x14d   : > { %v500_v26 = vadd.f32 %v470_v25, %v395_v16  ;;  %v483_v27 = vpop.f32.mrf.mxu3  ;;  %v409_v28 = vpop.f32.mrf.mxu0  ;;  %v939_v16 = vperm.slane %v937_v4, 1 }
 0x14e   : > { %v501_v29 = vadd.f32 %v483_v27, %v408_v22  ;;  %v940_v27 = vperm.slane %v937_v4, 2 }
 0x14f   : > { %vm2645_vm15 = vcmp.eq.s32.totalorder %v939_v16, 1 }
 0x150   : > { %v422_v30 = vpop.f32.mrf.mxu1  ;;  %vm2655_vm1 = vcmp.eq.s32.totalorder %v940_v27, 1 }
 0x154   : > { %v472_v31 = vpop.f32.mrf.mxu2 }
 0x155   : > { %v485_v32 = vpop.f32.mrf.mxu3  ;;  %v496_v33 = vpop.f32.mrf.mxu0 }
 0x156   : > { %v502_v7 = vadd.f32 %v496_v33, %v421_v24 }
 0x158   : > { %v549_v35 = vpop.f32.mrf.mxu1 }
 0x159   : > { %v579_v61 = vadd.f32 %v549_v35, %v500_v26  ;;  %v3183_v26 = vmov 0 }
 0x15a   : > { %v3184_v26 = vsel %vm2645_vm15, 4294967295, %v3183_v26 }
 0x15c   : > { %v562_v37 = vpop.f32.mrf.mxu2 }
 0x15d   : > { %v498_v38 = vpop.f32.mrf.mxu0  ;;  %v580_v3 = vadd.f32 %v562_v37, %v501_v29 }
 0x15e   : > { %v575_v34 = vpop.f32.mrf.mxu3  ;;  %v3185_v38 = vmov 0 }
 0x15f   : > { %v581_v11 = vadd.f32 %v575_v34, %v502_v7  ;;  %v3186_v38 = vsel %vm2655_vm1, 4294967295, %v3185_v38 }
 0x160   : > { %v551_v39 = vpop.f32.mrf.mxu1 }
 0x164   : > { %v564_v40 = vpop.f32.mrf.mxu2 }
 0x165   : > { %v608_v36 = vpop.f32.mrf.mxu0 }
 0x166   : > { %v577_v41 = vpop.f32.mrf.mxu3  ;;  %v638_v1 = vadd.f32 %v608_v36, %v579_v61 }
 0x168   : > { %v621_v42 = vpop.f32.mrf.mxu1 }
 0x169   : > { %v639_v8 = vadd.f32 %v621_v42, %v580_v3 }
 0x16c   : > { %v634_v43 = vpop.f32.mrf.mxu2 }
 0x16d   : > { %v610_v44 = vpop.f32.mrf.mxu0  ;;  %v640_v17 = vadd.f32 %v634_v43, %v581_v11 }
 0x16e   : > { %v682_v45 = vpop.f32.mrf.mxu3 }
 0x16f   : > { %v712_v5 = vadd.f32 %v682_v45, %v638_v1 }
 0x170   : > { %v623_v46 = vpop.f32.mrf.mxu1 }
 0x174   : > { %v636_v47 = vpop.f32.mrf.mxu2 }
 0x175   : > { %v695_v48 = vpop.f32.mrf.mxu0 }
 0x176   : > { %v684_v49 = vpop.f32.mrf.mxu3  ;;  %v713_v13 = vadd.f32 %v695_v48, %v639_v8 }
 0x178   : > { %v708_v50 = vpop.f32.mrf.mxu1 }
 0x179   : > { %v714_v23 = vadd.f32 %v708_v50, %v640_v17 }
 0x17c   : > { %v756_v51 = vpop.f32.mrf.mxu2 }
 0x17d   : > { %v697_v52 = vpop.f32.mrf.mxu0  ;;  %v786_v9 = vadd.f32 %v756_v51, %v712_v5 }
 0x17e   : > { %v769_v53 = vpop.f32.mrf.mxu3 }
 0x17f   : > { %v787_v18 = vadd.f32 %v769_v53, %v713_v13 }
 0x180   : > { %v710_v54 = vpop.f32.mrf.mxu1 }
 0x184   : > { %v758_v57 = vpop.f32.mrf.mxu2 }
 0x185   : > { %v782_v58 = vpop.f32.mrf.mxu0 }
 0x186   : > { %v771_v59 = vpop.f32.mrf.mxu3  ;;  %v788_v28 = vadd.f32 %v782_v58, %v714_v23 }
 0x188   : > { %v830_v60 = vpop.f32.mrf.mxu1 }
 0x189   : > { %v860_v14 = vadd.f32 %v830_v60, %v786_v9 }
 0x18c   : > { %v843_v62 = vpop.f32.mrf.mxu2 }
 0x18d   : > { %v784_v63 = vpop.f32.mrf.mxu0  ;;  %v861_v25 = vadd.f32 %v843_v62, %v787_v18 }
 0x18e   : > { %v856_v2 = vpop.f32.mrf.mxu3 }
 0x18f   : > { %v862_v31 = vadd.f32 %v856_v2, %v788_v28 }
 0x190   : > { %v832_v6 = vpop.f32.mrf.mxu1 }
 0x194   : > { %v845_v15 = vpop.f32.mrf.mxu2 }
 0x195   : > { %v904_v19 = vpop.f32.mrf.mxu0 }
 0x196   : > { %v934_v20 = vadd.f32 %v904_v19, %v860_v14  ;;  %v858_v22 = vpop.f32.mrf.mxu3 }
 0x198   : > { %v917_v24 = vpop.f32.mrf.mxu1  ;;  %v944_v29 = vsel %vm2641_vm0, %v934_v20, 0.0 }
 0x199   : > { %v935_v30 = vadd.f32 %v917_v24, %v861_v25  ;;  %v947_v33 = vsel %vm3163_vm8, %v944_v29, 0.0 }
 0x19b   : > { %v945_v32 = vsel %vm2645_vm15, %v935_v30, 0.0 }
 0x19c   : > { %v948_v35 = vsel %vm3163_vm8, %v945_v32, 0.0  ;;  %v930_v37 = vpop.f32.mrf.mxu2 }
 0x19d   : > { %v936_v34 = vadd.f32 %v930_v37, %v862_v31  ;;  %v906_v39 = vpop.f32.mrf.mxu0  ;;  %v949_v36 = vadd.f32 %v948_v35, %v947_v33 }
 0x19f   : > { %v946_v40 = vsel %vm2655_vm1, %v936_v34, 0.0 }
 0x1a0   : > { %v919_v41 = vpop.f32.mrf.mxu1  ;;  %v951_v42 = vsel %vm3157_vm2, %v946_v40, 0.0 }
 0x1a1   : > { %v952_v43 = vadd.f32 %v951_v42, %v949_v36 }
 0x1a3   : > { %953 = vadd.xlane.f32.xlu1 %v952_v43 }
 0x1a4   : > { %v932_v44 = vpop.f32.mrf.mxu2 }
 0x216   : > { %v954_v45 = vpop.xlane.xlu1 %953 }
 0x217   : > { %v955_v46 = vmul.f32 0.00390625, %v954_v45 }
 0x219   : > { %v956_v47 = vsub.f32 %v934_v20, %v955_v46  ;;  %v957_v48 = vsub.f32 %v935_v30, %v955_v46  ;;  %v958_v49 = vsub.f32 %v936_v34, %v955_v46 }
 0x21b   : > { %v959_v50 = vsel %vm2641_vm0, %v956_v47, 0.0  ;;  %v960_v51 = vsel %vm2645_vm15, %v957_v48, 0.0  ;;  %v961_v52 = vsel %vm2655_vm1, %v958_v49, 0.0  ;;  %vm3201_vm1 = vcmask 1031168  }
 0x21c   : > { %v962_v53 = vmul.f32 %v959_v50, %v959_v50  ;;  %v963_v54 = vmul.f32 %v960_v51, %v960_v51  ;;  %v964_v57 = vmul.f32 %v961_v52, %v961_v52 }
 0x21e   : > { %v965_v58 = vsel %vm3163_vm8, %v962_v53, 0.0  ;;  %v966_v59 = vsel %vm3163_vm8, %v963_v54, 0.0  ;;  %v968_v61 = vsel %vm3157_vm2, %v964_v57, 0.0  ;;  %vm3169_vm2 = vcmp.eq.s32.totalorder %v2629_v55, 17 }
 0x21f   : > { %v967_v60 = vadd.f32 %v966_v59, %v965_v58 }
 0x221   : > { %v969_v62 = vadd.f32 %v968_v61, %v967_v60 }
 0x223   : > { %970 = vadd.xlane.f32.xlu2 %v969_v62 }
 0x296   : > { %v971_v63 = vpop.xlane.xlu2 %970 }
 0x297   : > { %v972_v1 = vmul.f32 0.00390625, %v971_v63 }
 0x299   : > { %v973_v2 = vadd.f32 1e-05, %v972_v1 }
 0x29b   : > { %2304 = vrsqrt.f32 %v973_v2  ;;  %vm980_vm5 = vweird.f32 %v973_v2 }
 0x2a1   : > { %v2305_v3 = vpop.eup %2304 }
 0x2a2   : > { %v975_v4 = vmul.f32 %v2305_v3, %v973_v2  ;;  %vm981_vm4 = vweird.f32 %v2305_v3 }
 0x2a3   : > { %vm982_vm6 = vmor %vm980_vm5, %vm981_vm4  ;;  %vm1006_vm4 = vcmp.eq.s32.totalorder %v2634_v56, 0  ;;  %vm3168_vm5 = vcmp.eq.s32.totalorder %v2634_v56, 17 }
 0x2a4   : > { %v976_v5 = vmul.f32 %v2305_v3, %v975_v4 }
 0x2a6   : > { %v977_v6 = vmul.f32 0.5, %v976_v5 }
 0x2a8   : > { %v978_v7 = vsub.f32 1.5, %v977_v6 }
 0x2aa   : > { %v979_v8 = vmul.f32 %v2305_v3, %v978_v7 }
 0x2ac   : > { %v983_v9 = vsel %vm982_vm6, %v2305_v3, %v979_v8  ;;  %vm3167_vm6 = vcmp.eq.s32.totalorder %v2629_v55, 0 }
 0x2ad   : > { %v2671_v10 = vmul.f32 %v983_v9, %v956_v47  ;;  %v2673_v11 = vmul.f32 %v983_v9, %v957_v48  ;;  %v986_v13 = vmul.f32 %v983_v9, %v958_v49  ;;  %vm1150_vm12 = vmand %vm3167_vm6, %vm1006_vm4 }
 0x2af   : > { %v987_v14 = vmax.f32 %v2671_v10, 0.0  ;;  %v988_v15 = vmax.f32 %v2673_v11, 0.0  ;;  %v2677_v16 = vmax.f32 %v986_v13, 0.0 }
 0x2b1   : > { %v990_v17 = vpack.c.bf16 %v988_v15, %v987_v14  ;;  %v991_v18 = vpack.c.bf16 %v2677_v16, %v2677_v16 }
 0x2b3   : > { %v994_v19 = vrot.slane %v990_v17, 2  ;;  %v995_v20 = vrot.slane %v991_v18, 4  ;;  %v996_v22 = vrot.slane %v991_v18, 6 }
 0x2b5   : > { %v999_v23 = vsel %vm3165_vm3, %v990_v17, %v994_v19  ;;  %v1002_v25 = vsel %vm3164_vm7, %v995_v20, %v996_v22 }
 0x2b6   : > { %v1003_v24 = vsel %vm3163_vm8, %v999_v23, %v1002_v25  ;;  %vm2757_vm8 = vmand %vm3169_vm2, %vm1006_vm4 }
 0x2b7   : > { %1005 = vst.msk [vmem:[#allocation2 + $0x2] sm:$0x3f] %vm2480_vm9, %v1003_v24 }
 0x2be   : > { %v1007_v27 = vld [vmem:[#allocation2 + $0x2] sm:$0x3f] }
 0x2bf   : > { %v1008_v28 = vunpack.c.l.bf16 %v1007_v27  ;;  %v1009_v29 = vunpack.c.h.bf16 %v1007_v27  ;;  %v1041_v30 = vld [vmem:[#allocation2] sm:$0xff] }
 0x2c0   : > { %v2690_v31 = vunpack.c.l.bf16 %v1041_v30  ;;  %v2692_v32 = vunpack.c.h.bf16 %v1041_v30  ;;  %v1079_v39 = vld [vmem:[#allocation2 + $0x2] sm:$0x3f] }
 0x2c1   : > { %1019 = vst [vmem:[#allocation1] ss:$2 sm:$0xff] %v1008_v28  ;;  %v1081_v40 = vunpack.c.h.bf16 %v1079_v39  ;;  %v1080_v42 = vunpack.c.l.bf16 %v1079_v39  ;;  %v1151_v49 = vld [vmem:[#allocation2 + $0x2] sm:$0x3f] }
 0x2c2   : > { %1021 = vst [vmem:[#allocation1 + $0x10] ss:$2 sm:$0xff] %v1009_v29  ;;  %v1153_v50 = vunpack.c.h.bf16 %v1151_v49  ;;  %v1152_v54 = vunpack.c.l.bf16 %v1151_v49  ;;  %v1185_v60 = vld [vmem:[#allocation2 + $0x2] sm:$0x3f] }
 0x2c3   : > { %v1187_v61 = vunpack.c.h.bf16 %v1185_v60  ;;  %v1186_v1 = vunpack.c.l.bf16 %v1185_v60 }
 0x2c8   : > { %v1022_v33 = vld.sshfl [vmem:[#allocation1] sm:$0xff pattern:$0x75316420]  ;;  %v1023_v35 = vld.sshfl [vmem:[#allocation1 + $0x8] sm:$0xff pattern:$0x75316420] }
 0x2c9   : > { %v2244_v37 = vpack.i.bf16 %v1023_v35, %v1022_v33  ;;  %1053 = vst [vmem:[#allocation1] ss:$2 sm:$0xff] %v2690_v31  ;;  %v1024_v34 = vld.sshfl [vmem:[#allocation1 + $0x10] sm:$0xff pattern:$0x75316420] }
 0x2ca   : > { %1055 = vst [vmem:[#allocation1 + $0x10] ss:$2 sm:$0xff] %v2692_v32 }
 0x2cb   : > { %2245 = vrot.lane.b32.xlu0 %v2244_v37, %s2381_s25 }
 0x2d0   : > { %v1056_v36 = vld.sshfl [vmem:[#allocation1] sm:$0xff pattern:$0x75316420]  ;;  %v1057_v41 = vld.sshfl [vmem:[#allocation1 + $0x8] sm:$0xff pattern:$0x75316420] }
 0x2d1   : > { %v1058_v43 = vld.sshfl [vmem:[#allocation1 + $0x10] sm:$0xff pattern:$0x75316420]  ;;  %v1059_v44 = vld.sshfl [vmem:[#allocation1 + $0x18] sm:$0xff pattern:$0x75316420]  ;;  %v2249_v46 = vpack.i.bf16 %v1057_v41, %v1056_v36 }
 0x2d2   : > { %1093 = vst [vmem:[#allocation1 + $0x10] ss:$2 sm:$0xff] %v1081_v40  ;;  %v2254_v53 = vpack.i.bf16 %v1059_v44, %v1058_v43  ;;  %v1044_v41 = vsel %vm3168_vm5, 1, %v2372_v0 }
 0x2d3   : > { %1029 = vrot.lane.b32.xlu0 %v1024_v34, %s2381_s25  ;;  %1091 = vst [vmem:[#allocation1] ss:$2 sm:$0xff] %v1080_v42  ;;  %s2388_s25 = smov 38   ;;  %v1010_v34 = vsel %vm1006_vm4, 1, %v2372_v0  ;;  %vm3199_vm4 = vcmp.eq.s32.totalorder %v2634_v56, 17 }
 0x2d4   : > { %v1011_v40 = vperm.slane %v1010_v34, 0  ;;  %v1012_v36 = vperm.slane %v1010_v34, 1  ;;  %v1013_v42 = vperm.slane %v1010_v34, 2 }
 0x2d6   : > { %vm2727_vm13 = vcmp.eq.s32.totalorder %v1011_v40, 1  ;;  %vm2731_vm10 = vcmp.eq.s32.totalorder %v1012_v36, 1  ;;  %vm2737_vm11 = vcmp.eq.s32.totalorder %v1013_v42, 1 }
 0x2d9   : > { %v1096_v45 = vld.sshfl [vmem:[#allocation1 + $0x10] sm:$0xff pattern:$0x75316420] }
 0x2da   : > { %1101 = vrot.lane.b32.xlu2 %v1096_v45, %s2382_s26  ;;  %1127 = vst [vmem:[#allocation1 + $0x10] ss:$2 sm:$0xff] %v2692_v32  ;;  %v1094_v47 = vld.sshfl [vmem:[#allocation1] sm:$0xff pattern:$0x75316420]  ;;  %v1045_v45 = vperm.slane %v1044_v41, 0 }
 0x2db   : > { %2250 = vrot.lane.b32.xlu0 %v2249_v46, %s2383_s30  ;;  %v1095_v48 = vld.sshfl [vmem:[#allocation1 + $0x8] sm:$0xff pattern:$0x75316420]  ;;  %v1082_v46 = vsel %vm3167_vm6, 1, %v2372_v0 }
 0x2dc   : > { %1125 = vst [vmem:[#allocation1] ss:$2 sm:$0xff] %v2690_v31  ;;  %v2259_v62 = vpack.i.bf16 %v1095_v48, %v1094_v47  ;;  %vm2761_vm7 = vcmp.eq.s32.totalorder %v1045_v45, 1 }
 0x2e1   : > { %v1130_v51 = vld.sshfl [vmem:[#allocation1 + $0x10] sm:$0xff pattern:$0x75316420]  ;;  %v1131_v52 = vld.sshfl [vmem:[#allocation1 + $0x18] sm:$0xff pattern:$0x75316420] }
 0x2e2   : > { %1165 = vst [vmem:[#allocation1 + $0x10] ss:$2 sm:$0xff] %v1153_v50  ;;  %v2269_v5 = vpack.i.bf16 %v1131_v52, %v1130_v51  ;;  %v1047_v50 = vperm.slane %v1044_v41, 2  ;;  %v1046_v52 = vperm.slane %v1044_v41, 1 }
 0x2e3   : > { %2255 = vrot.lane.b32.xlu0 %v2254_v53, %s2383_s30  ;;  %v1128_v57 = vld.sshfl [vmem:[#allocation1] sm:$0xff pattern:$0x75316420]  ;;  %v1129_v58 = vld.sshfl [vmem:[#allocation1 + $0x8] sm:$0xff pattern:$0x75316420] }
 0x2e4   : > { %v2264_v59 = vpack.i.bf16 %v1129_v58, %v1128_v57  ;;  %1163 = vst [vmem:[#allocation1] ss:$2 sm:$0xff] %v1152_v54  ;;  %v1083_v53 = vperm.slane %v1082_v46, 0  ;;  %v1116_v54 = vsel %vm3169_vm2, 1, %v2372_v0  ;;  %vm2767_vm5 = vcmp.eq.s32.totalorder %v1047_v50, 1 }
 0x2e5   : > { %vm3200_vm2 = vcmp.eq.s32.totalorder %v2629_v55, 0  ;;  %vm2782_vm6 = vcmp.eq.s32.totalorder %v1046_v52, 1  ;;  %v3220_v52 = vmov 0 }
 0x2e6   : > { %2265 = vrot.lane.b32.xlu1 %v2264_v59, %s2384_s6  ;;  %vm1184_vm0 = vmand %vm3200_vm2, %vm3199_vm4  ;;  %vm2786_vm3 = vcmp.eq.s32.totalorder %v1083_v53, 1 }
 0x2e9   : > { %v1168_v63 = vld.sshfl [vmem:[#allocation1 + $0x10] sm:$0xff pattern:$0x75316420] }
 0x2ea   : > { %1199 = vst [vmem:[#allocation1 + $0x10] ss:$2 sm:$0xff] %v1187_v61  ;;  %v1085_v61 = vperm.slane %v1082_v46, 2 }
 0x2eb   : > { %v1166_v2 = vld.sshfl [vmem:[#allocation1] sm:$0xff pattern:$0x75316420]  ;;  %v1167_v3 = vld.sshfl [vmem:[#allocation1 + $0x8] sm:$0xff pattern:$0x75316420]  ;;  %2260 = vrot.lane.b32.xlu0 %v2259_v62, %s2382_s26 }
 0x2ec   : > { %1197 = vst [vmem:[#allocation1] ss:$2 sm:$0xff] %v1186_v1  ;;  %v2274_v9 = vpack.i.bf16 %v1167_v3, %v1166_v2  ;;  %v1117_v3 = vperm.slane %v1116_v54, 0 }
 0x2f1   : > { %v1202_v4 = vld.sshfl [vmem:[#allocation1 + $0x10] sm:$0xff pattern:$0x75316420] }
 0x2f2   : > { %1207 = vrot.lane.b32.xlu1 %v1202_v4, %s2385_s7  ;;  %1233 = vst [vmem:[#allocation1 + $0x10] ss:$2 sm:$0xff] %v2692_v32  ;;  %v1119_v4 = vperm.slane %v1116_v54, 2 }
 0x2f3   : > { %2270 = vrot.lane.b32.xlu0 %v2269_v5, %s2384_s6  ;;  %v1200_v6 = vld.sshfl [vmem:[#allocation1] sm:$0xff pattern:$0x75316420]  ;;  %v1201_v7 = vld.sshfl [vmem:[#allocation1 + $0x8] sm:$0xff pattern:$0x75316420] }
 0x2f4   : > { %v2279_v8 = vpack.i.bf16 %v1201_v7, %v1200_v6  ;;  %1231 = vst [vmem:[#allocation1] ss:$2 sm:$0xff] %v2690_v31  ;;  %v1154_v5 = vsel %vm1150_vm12, 1, %v2372_v0  ;;  %vm3206_vm12 = vcmask 15360  }
 0x2f5   : > { %vm3215_vm2 = vmmov %vm3206_vm12 }
 0x2f6   : > { %2280 = vrot.lane.b32.xlu2 %v2279_v8, %s2385_s7 }
 0x2f9   : > { %v1236_v13 = vld.sshfl [vmem:[#allocation1 + $0x10] sm:$0xff pattern:$0x75316420]  ;;  %v1237_v17 = vld.sshfl [vmem:[#allocation1 + $0x18] sm:$0xff pattern:$0x75316420] }
 0x2fa   : > { %v2289_v18 = vpack.i.bf16 %v1237_v17, %v1236_v13  ;;  %1271 = vst [vmem:[#allocation1 + $0x10] ss:$2 sm:$0xff] %v2692_v32  ;;  %v1084_v13 = vperm.slane %v1082_v46, 1 }
 0x2fb   : > { %v1234_v19 = vld.sshfl [vmem:[#allocation1] sm:$0xff pattern:$0x75316420]  ;;  %v1235_v20 = vld.sshfl [vmem:[#allocation1 + $0x8] sm:$0xff pattern:$0x75316420]  ;;  %2275 = vrot.lane.b32.xlu0 %v2274_v9, %s2386_s8 }
 0x2fc   : > { %1269 = vst [vmem:[#allocation1] ss:$2 sm:$0xff] %v2690_v31  ;;  %v2284_v24 = vpack.i.bf16 %v1235_v20, %v1234_v19  ;;  %v2802_v19 = vsel %vm2757_vm8, 1, %v2372_v0  ;;  %vm2817_vm8 = vcmp.eq.s32.totalorder %v1119_v4, 1 }
 0x2fd   : > { %v1225_v36 = vperm.slane %v2802_v19, 2 }
 0x2fe   : > { %2290 = vrot.lane.b32.xlu2 %v2289_v18, %s2387_s23 }
 0x301   : > { %v1274_v27 = vld.sshfl [vmem:[#allocation1 + $0x10] sm:$0xff pattern:$0x75316420]  ;;  %v1275_v28 = vld.sshfl [vmem:[#allocation1 + $0x18] sm:$0xff pattern:$0x75316420] }
 0x302   : > { %v2299_v29 = vpack.i.bf16 %v1275_v28, %v1274_v27  ;;  %v1156_v28 = vperm.slane %v1154_v5, 1 }
 0x303   : > { %1173 = vrot.lane.b32.xlu0 %v1168_v63, %s2386_s8  ;;  %v1272_v22 = vld.sshfl [vmem:[#allocation1] sm:$0xff pattern:$0x75316420]  ;;  %v1273_v23 = vld.sshfl [vmem:[#allocation1 + $0x8] sm:$0xff pattern:$0x75316420] }
 0x304   : > { %v2294_v25 = vpack.i.bf16 %v1273_v23, %v1272_v22  ;;  %v1155_v23 = vperm.slane %v1154_v5, 0  ;;  %v3226_v63 = vmov 0 }
 0x306   : > { %2295 = vrot.lane.b32.xlu1 %v2294_v25, %s2388_s25  ;;  %v1188_v25 = vsel %vm1184_vm0, 1, %v2372_v0  ;;  %vm3223_vm0 = vcmask 769024  }
 0x307   : > { %v1189_v40 = vperm.slane %v1188_v25, 0 }
 0x309   : > { %vm2864_vm15 = vcmp.eq.s32.totalorder %v1189_v40, 1 }
 0x30a   : > { %v3227_v63 = vsel %vm2864_vm15, 4294967295, %v3226_v63  ;;  %vm3236_vm15 = vcmask 293888  }
 0x30b   : > { %2285 = vrot.lane.b32.xlu0 %v2284_v24, %s2387_s23 }
 0x313   : > { %2300 = vrot.lane.b32.xlu0 %v2299_v29, %s2388_s25  ;;  %v1157_v29 = vperm.slane %v1154_v5, 2 }
 0x334   : > { %v2717_v39 = vpop.permute.xlu2 %1101 }
 0x33d   : > { %v2246_v30 = vpop.permute.xlu0 %2245 }
 0x33e   : > { %v2248_v43 = vunpack.i.h.bf16 %v2246_v30  ;;  %v2247_v44 = vunpack.i.l.bf16 %v2246_v30 }
 0x340   : > { %v1032_v57 = vsel %vm3166_vm14, %v2247_v44, %v2248_v43  ;;  %v1191_v44 = vperm.slane %v1188_v25, 2  ;;  %vm2856_vm14 = vcmp.eq.s32.totalorder %v1157_v29, 1 }
 0x341   : > { %v1037_v7 = vsel %vm2727_vm13, %v1032_v57, %v987_v14  ;;  %v1118_v14 = vperm.slane %v1116_v54, 1  ;;  %vm2813_vm13 = vcmp.eq.s32.totalorder %v1117_v3, 1 }
 0x343   : > { %vm2835_vm4 = vcmp.eq.s32.totalorder %v1118_v14, 1 }
 0x345   : > { %v2702_v32 = vpop.permute.xlu0 %1029 }
 0x346   : > { %v1033_v6 = vsel %vm3201_vm1, %v2248_v43, %v2702_v32  ;;  %v1039_v17 = vsel %vm2737_vm11, %v2702_v32, %v2677_v16  ;;  %vm2795_vm1 = vcmp.eq.s32.totalorder %v1085_v61, 1  ;;  %vm3222_vm11 = vcmask 752640  }
 0x347   : > { %v2811_v16 = vsel %vm2731_vm10, %v1033_v6, %v988_v15  ;;  %vm2829_vm10 = vcmp.eq.s32.totalorder %v1084_v13, 1  ;;  %v1223_v13 = vperm.slane %v2802_v19, 0 }
 0x34d   : > { %v2704_v33 = vpop.permute.xlu0 %2250 }
 0x34e   : > { %v2253_v58 = vunpack.i.h.bf16 %v2704_v33  ;;  %v2252_v59 = vunpack.i.l.bf16 %v2704_v33 }
 0x350   : > { %v2751_v60 = vpop.permute.xlu2 %2280  ;;  %v1069_v10 = vsel %vm3206_vm12, %v2252_v59, %v2253_v58  ;;  %vm2839_vm12 = vcmp.eq.s32.totalorder %v1155_v23, 1 }
 0x351   : > { %v2283_v32 = vunpack.i.h.bf16 %v2751_v60  ;;  %v2282_v11 = vunpack.i.l.bf16 %v2751_v60 }
 0x353   : > { %v1210_v57 = vsel %vm3223_vm0, %v2282_v11, %v2283_v32 }
 0x355   : > { %v2706_v31 = vpop.permute.xlu0 %2255 }
 0x356   : > { %v2258_v20 = vunpack.i.h.bf16 %v2706_v31  ;;  %v2257_v22 = vunpack.i.l.bf16 %v2706_v31  ;;  %v1075_v31 = vsel %vm2761_vm7, %v1069_v10, %v1037_v7  ;;  %vm2847_vm7 = vcmp.eq.s32.totalorder %v1156_v28, 1 }
 0x357   : > { %v3221_v52 = vsel %vm2847_vm7, 4294967295, %v3220_v52  ;;  %vm2876_vm7 = vcmp.eq.s32.totalorder %v1191_v44, 1 }
 0x358   : > { %v2765_v1 = vpop.permute.xlu1 %2265  ;;  %v1071_v41 = vsel %vm3215_vm2, %v2257_v22, %v2258_v20  ;;  %v2291_v47 = vpop.permute.xlu2 %2290  ;;  %v1070_v53 = vsel %vm3215_vm2, %v2253_v58, %v2257_v22  ;;  %vm3229_vm2 = vcmp.eq.s32.totalorder %v2629_v55, 17 }
 0x359   : > { %v2268_v45 = vunpack.i.h.bf16 %v2765_v1  ;;  %v2267_v46 = vunpack.i.l.bf16 %v2765_v1  ;;  %v1077_v62 = vsel %vm2767_vm5, %v1071_v41, %v1039_v17  ;;  %v2293_v58 = vunpack.i.h.bf16 %v2291_v47 }
 0x35a   : > { %v2292_v1 = vunpack.i.l.bf16 %v2291_v47  ;;  %vm2880_vm5 = vcmp.eq.s32.totalorder %v1225_v36, 1  ;;  %v1111_v7 = vsel %vm2795_vm1, %v2717_v39, %v1077_v62  ;;  %v1224_v17 = vperm.slane %v2802_v19, 1 }
 0x35b   : > { %v1141_v55 = vsel %vm3236_vm15, %v2267_v46, %v2268_v45 }
 0x35d   : > { %v2708_v35 = vpop.permute.xlu0 %2260 }
 0x35e   : > { %v2263_v15 = vunpack.i.h.bf16 %v2708_v35  ;;  %v2262_v33 = vunpack.i.l.bf16 %v2708_v35  ;;  %v1190_v35 = vperm.slane %v1188_v25, 1 }
 0x360   : > { %v1104_v54 = vsel %vm3222_vm11, %v2262_v33, %v2263_v15  ;;  %vm3228_vm11 = vcmp.eq.s32.totalorder %v2634_v56, 17  ;;  %vm2872_vm9 = vcmp.eq.s32.totalorder %v1190_v35, 1  ;;  %v1076_v56 = vsel %vm2782_vm6, %v1070_v53, %v2811_v16 }
 0x361   : > { %vm1256_vm0 = vmand %vm3229_vm2, %vm3228_vm11  ;;  %v1109_v4 = vsel %vm2786_vm3, %v1104_v54, %v1075_v31  ;;  %vm1284_vm2 = vcmask 310272   ;;  %vm3238_vm6 = vcmask 752640   ;;  %vm3240_vm3 = vcmask 277504  }
 0x362   : > { %vm3237_vm11 = vmmov %vm3236_vm15  ;;  %v1260_v8 = vsel %vm1256_vm0, 1, %v2372_v0  ;;  %v1105_v10 = vsel %vm3238_vm6, %v2263_v15, %v2717_v39  ;;  %vm3239_vm15 = vcmask 736256   ;;  %v1249_v22 = vsel %vm3240_vm3, %v2292_v1, %v2293_v58 }
 0x363   : > { %v1147_v18 = vsel %vm2813_vm13, %v1141_v55, %v1109_v4  ;;  %vm3241_vm1 = vmmov %vm3239_vm15  ;;  %v1261_v16 = vperm.slane %v1260_v8, 0  ;;  %v1262_v28 = vperm.slane %v1260_v8, 1  ;;  %v1110_v29 = vsel %vm2829_vm10, %v1105_v10, %v1076_v56 }
 0x364   : > { %v1208_v48 = vpop.permute.xlu1 %1207  ;;  %vm1226_vm13 = vcmp.eq.s32.totalorder %v1223_v13, 1  ;;  %v1263_v11 = vperm.slane %v1260_v8, 2  ;;  %vm2920_vm0 = vcmp.eq.s32.totalorder %v1224_v17, 1  ;;  %vm3246_vm10 = vnez %v3221_v52  ;;  %vm3248_vm6 = vmmov %vm3240_vm3 }
 0x365   : > { %v2711_v37 = vpop.permute.xlu0 %2270 }
 0x366   : > { %v2273_v50 = vunpack.i.h.bf16 %v2711_v37  ;;  %v2272_v51 = vunpack.i.l.bf16 %v2711_v37 }
 0x368   : > { %v1143_v5 = vsel %vm3237_vm11, %v2272_v51, %v2273_v50  ;;  %v1142_v23 = vsel %vm3237_vm11, %v2268_v45, %v2272_v51  ;;  %vm3254_vm11 = vnez %v3180_v12 }
 0x369   : > { %v1149_v25 = vsel %vm2817_vm8, %v1143_v5, %v1111_v7  ;;  %vm3242_vm8 = vcmask 769024   ;;  %v1148_v15 = vsel %vm2835_vm4, %v1142_v23, %v1110_v29  ;;  %vm2932_vm4 = vcmp.eq.s32.totalorder %v1261_v16, 1 }
 0x36a   : > { %v1211_v27 = vsel %vm3242_vm8, %v2283_v32, %v1208_v48 }
 0x36d   : > { %v2735_v49 = vpop.permute.xlu0 %2275 }
 0x36e   : > { %v2278_v61 = vunpack.i.h.bf16 %v2735_v49  ;;  %v2277_v37 = vunpack.i.l.bf16 %v2735_v49 }
 0x370   : > { %v1176_v9 = vsel %vm3239_vm15, %v2277_v37, %v2278_v61  ;;  %vm1265_vm15 = vcmp.eq.s32.totalorder %v1262_v28, 1 }
 0x371   : > { %v1181_v24 = vsel %vm2839_vm12, %v1176_v9, %v1147_v18  ;;  %vm3247_vm12 = vnez %v3227_v63 }
 0x372   : > { %v1215_v60 = vsel %vm3247_vm12, %v1210_v57, %v1181_v24 }
 0x375   : > { %v2821_v30 = vpop.permute.xlu0 %1173 }
 0x376   : > { %v1177_v0 = vsel %vm3241_vm1, %v2278_v61, %v2821_v30  ;;  %v1183_v39 = vsel %vm2856_vm14, %v2821_v30, %v1149_v25  ;;  %vm3245_vm14 = vmmov %vm3240_vm3  ;;  %vm1266_vm3 = vcmp.eq.s32.totalorder %v1263_v11, 1 }
 0x377   : > { %v1182_v31 = vsel %vm3246_vm10, %v1177_v0, %v1148_v15  ;;  %v1217_v34 = vsel %vm2876_vm7, %v1208_v48, %v1183_v39  ;;  %vm3252_vm7 = vcmask 1045508   ;;  %vm3261_vm10 = vcmask 31744  }
 0x378   : > { %v2296_v19 = vpop.permute.xlu1 %2295  ;;  %v1216_v45 = vsel %vm2872_vm9, %v1211_v27, %v1182_v31  ;;  %v1255_v46 = vsel %vm2880_vm5, %v1249_v22, %v1217_v34  ;;  %vm3251_vm9 = vcmask 1041408   ;;  %vm3253_vm5 = vcmask 1043456   ;;  %vm3262_vm12 = vmmov %vm3261_vm10 }
 0x379   : > { %v2298_v40 = vunpack.i.h.bf16 %v2296_v19  ;;  %v2297_v36 = vunpack.i.l.bf16 %v2296_v19  ;;  %vm3258_vm8 = vmmov %vm3251_vm9 }
 0x37b   : > { %v1285_v47 = vsel %vm1284_vm2, %v2297_v36, %v2298_v40 }
 0x37d   : > { %v2286_v6 = vpop.permute.xlu0 %2285 }
 0x37e   : > { %v2288_v14 = vunpack.i.h.bf16 %v2286_v6  ;;  %v2287_v20 = vunpack.i.l.bf16 %v2286_v6 }
 0x380   : > { %v1247_v33 = vsel %vm3245_vm14, %v2287_v20, %v2288_v14  ;;  %v1248_v32 = vsel %vm3248_vm6, %v2288_v14, %v2292_v1  ;;  %vm3263_vm6 = vmmov %vm3261_vm10 }
 0x381   : > { %v1253_v43 = vsel %vm1226_vm13, %v1247_v33, %v1215_v60  ;;  %v1254_v48 = vsel %vm2920_vm0, %v1248_v32, %v1216_v45  ;;  %vm3259_vm0 = vmmov %vm3258_vm8 }
 0x382   : > { %v1291_v52 = vsel %vm2932_vm4, %v1285_v47, %v1253_v43  ;;  %vm3260_vm14 = vmmov %vm3259_vm0  ;;  %vm3264_vm4 = vcmask 154624  }
 0x385   : > { %v2301_v42 = vpop.permute.xlu0 %2300 }
 0x386   : > { %v2303_v35 = vunpack.i.h.bf16 %v2301_v42  ;;  %v2302_v44 = vunpack.i.l.bf16 %v2301_v42 }
 0x388   : > { %v1286_v50 = vsel %vm1284_vm2, %v2298_v40, %v2302_v44  ;;  %v1287_v51 = vsel %vm1284_vm2, %v2302_v44, %v2303_v35  ;;  %vm3255_vm2 = vcmask 146432  }
 0x389   : > { %v1292_v53 = vsel %vm1265_vm15, %v1286_v50, %v1254_v48  ;;  %v1293_v54 = vsel %vm1266_vm3, %v1287_v51, %v1255_v46  ;;  %vm3256_vm1 = vmmov %vm3255_vm2  ;;  %v2147_v50 = vld [vmem:[%s3149_s2 + $0x2] sm:$0x3] }
 0x38a   : > { %v1294_v57 = vpack.c.bf16 %v1292_v53, %v1291_v52  ;;  %v1295_v59 = vpack.c.bf16 %v1293_v54, %v1293_v54  ;;  %vm3257_vm13 = vmmov %vm3256_vm1 }
 0x38b   : > { %vm3265_vm15 = vmmov %vm3259_vm0 }
 0x38c   : > { %v1298_v61 = vrot.slane %v1294_v57, 2  ;;  %v1299_v37 = vrot.slane %v1295_v59, 4  ;;  %v1300_v62 = vrot.slane %v1295_v59, 6  ;;  %vm3266_vm3 = vmmov %vm3264_vm4 }
 0x38e   : > { %v1303_v63 = vsel %vm3251_vm9, %v1294_v57, %v1298_v61  ;;  %v1306_v58 = vsel %vm3252_vm7, %v1299_v37, %v1300_v62  ;;  %vm3267_vm9 = vmmov %vm3259_vm0  ;;  %v1310_v37 = vld [vmem:[%s3149_s2] sm:$0x3] }
 0x38f   : > { %v1307_v1 = vsel %vm3253_vm5, %v1303_v63, %v1306_v58  ;;  %vm3268_vm7 = vmmov %vm3263_vm6 }
 0x390   : > { %1309 = vst.msk [vmem:[#allocation2 + $0x2] sm:$0x3f] %vm3254_vm11, %v1307_v1  ;;  %vm3269_vm5 = vmmov %vm3266_vm3  ;;  %vm3270_vm11 = vcmask 138240  }
 0x397   : > { %v1311_v3 = vld [vmem:[#allocation2] sm:$0xff] }
 0x398   : > { %1315 = vst [vmem:[#allocation1] ss:$4 sm:$0xff] %v1311_v3  ;;  %v1615_v10 = vld [vmem:[#allocation2 + $0x2] sm:$0x3f] }
 0x399   : > { %v1674_v25 = vld [vmem:[#allocation2 + $0x2] sm:$0x3f] }
 0x39a   : > { %v1747_v16 = vld [vmem:[#allocation2 + $0x2] sm:$0x3f] }
 0x39b   : > { %v1820_v11 = vld [vmem:[#allocation2 + $0x2] sm:$0x3f] }
 0x39c   : > { %v1893_v33 = vld [vmem:[#allocation2 + $0x2] sm:$0x3f] }
 0x39f   : > { %v1320_v49 = vld.sshfl [vmem:[#allocation1 + $0x10] sm:$0xff pattern:$0x73625140]  ;;  %v1318_v2 = vld.sshfl [vmem:[#allocation1 + $0x8] sm:$0xff pattern:$0x73625140] }
 0x3a0   : > { %1328 = vrot.lane.b32.xlu0 %v1320_v49, %s2373_s10  ;;  %1326 = vrot.lane.b32.xlu1 %v1318_v2, %s2373_s10  ;;  %v1316_v56 = vld.sshfl [vmem:[#allocation1] sm:$0xff pattern:$0x73625140]  ;;  %v1322_v55 = vld.sshfl [vmem:[#allocation1 + $0x18] sm:$0xff pattern:$0x73625140] }
 0x3a1   : > { %1324 = vrot.lane.b32.xlu2 %v1316_v56, %s2373_s10  ;;  %1386 = vst [vmem:[#allocation1] ss:$4 sm:$0xff] %v1311_v3  ;;  %v2154_v56 = vld [vmem:[%s3149_s2 + $0x4] sm:$0x3] }
 0x3a8   : > { %v1389_v4 = vld.sshfl [vmem:[#allocation1 + $0x8] sm:$0xff pattern:$0x73625140]  ;;  %v1387_v5 = vld.sshfl [vmem:[#allocation1] sm:$0xff pattern:$0x73625140] }
 0x3a9   : > { %1330 = vrot.lane.b32.xlu2 %v1322_v55, %s2373_s10  ;;  %1397 = vrot.lane.b32.xlu0 %v1389_v4, %s2374_s11  ;;  %v1391_v12 = vld.sshfl [vmem:[#allocation1 + $0x10] sm:$0xff pattern:$0x73625140]  ;;  %v1393_v6 = vld.sshfl [vmem:[#allocation1 + $0x18] sm:$0xff pattern:$0x73625140] }
 0x3aa   : > { %1395 = vrot.lane.b32.xlu1 %v1387_v5, %s2374_s11  ;;  %1461 = vst [vmem:[#allocation1] ss:$4 sm:$0xff] %v1311_v3 }
 0x3b1   : > { %1399 = vrot.lane.b32.xlu2 %v1391_v12, %s2374_s11  ;;  %v1462_v7 = vld.sshfl [vmem:[#allocation1] sm:$0xff pattern:$0x73625140]  ;;  %v1466_v13 = vld.sshfl [vmem:[#allocation1 + $0x10] sm:$0xff pattern:$0x73625140] }
 0x3b2   : > { %1401 = vrot.lane.b32.xlu1 %v1393_v6, %s2374_s11  ;;  %1470 = vrot.lane.b32.xlu0 %v1462_v7, %s2375_s12  ;;  %v1464_v17 = vld.sshfl [vmem:[#allocation1 + $0x8] sm:$0xff pattern:$0x73625140]  ;;  %v1468_v8 = vld.sshfl [vmem:[#allocation1 + $0x18] sm:$0xff pattern:$0x73625140] }
 0x3b3   : > { %1539 = vst [vmem:[#allocation1] ss:$4 sm:$0xff] %v1311_v3  ;;  %s2328_s11 = scalar_lea.hbm %s3152_s5, 24 }
 0x3b9   : > { %1472 = vrot.lane.b32.xlu2 %v1464_v17, %s2375_s12 }
 0x3ba   : > { %1474 = vrot.lane.b32.xlu1 %v1466_v13, %s2375_s12  ;;  %1476 = vrot.lane.b32.xlu0 %v1468_v8, %s2375_s12  ;;  %v1544_v9 = vld.sshfl [vmem:[#allocation1 + $0x10] sm:$0xff pattern:$0x73625140]  ;;  %v1542_v14 = vld.sshfl [vmem:[#allocation1 + $0x8] sm:$0xff pattern:$0x73625140] }
 0x3bb   : > { %v1540_v20 = vld.sshfl [vmem:[#allocation1] sm:$0xff pattern:$0x73625140]  ;;  %v1546_v22 = vld.sshfl [vmem:[#allocation1 + $0x18] sm:$0xff pattern:$0x73625140] }
 0x3bc   : > { %1617 = vst [vmem:[#allocation1] ss:$4 sm:$0xff] %v1615_v10 }
 0x3c1   : > { %1548 = vrot.lane.b32.xlu2 %v1540_v20, %s2376_s13 }
 0x3c2   : > { %1552 = vrot.lane.b32.xlu0 %v1544_v9, %s2376_s13  ;;  %1550 = vrot.lane.b32.xlu1 %v1542_v14, %s2376_s13 }
 0x3c3   : > { %v2967_v23 = vld.sshfl [vmem:[#allocation1] sm:$0xff pattern:$0x73625140]  ;;  %v2969_v18 = vld.sshfl [vmem:[#allocation1 + $0x8] sm:$0xff pattern:$0x73625140] }
 0x3c4   : > { %v2971_v0 = vld.sshfl [vmem:[#allocation1 + $0x10] sm:$0xff pattern:$0x73625140] }
 0x3c5   : > { %1676 = vst [vmem:[#allocation1] ss:$4 sm:$0xff] %v1674_v25 }
 0x3c9   : > { %1554 = vrot.lane.b32.xlu2 %v1546_v22, %s2376_s13 }
 0x3cc   : > { %v1679_v39 = vld.sshfl [vmem:[#allocation1 + $0x8] sm:$0xff pattern:$0x73625140]  ;;  %v1677_v19 = vld.sshfl [vmem:[#allocation1] sm:$0xff pattern:$0x73625140] }
 0x3cd   : > { %1685 = vrot.lane.b32.xlu0 %v1679_v39, %s2377_s14  ;;  %1683 = vrot.lane.b32.xlu1 %v1677_v19, %s2377_s14  ;;  %v1681_v28 = vld.sshfl [vmem:[#allocation1 + $0x10] sm:$0xff pattern:$0x73625140] }
 0x3ce   : > { %1749 = vst [vmem:[#allocation1] ss:$4 sm:$0xff] %v1747_v16  ;;  %v2158_v16 = vld [vmem:[%s3149_s2 + $0x6] sm:$0x3] }
 0x3d1   : > { %1687 = vrot.lane.b32.xlu2 %v1681_v28, %s2377_s14  ;;  %s215_s14 = sand.u32 1, %s2362_s19  }
 0x3d5   : > { %v1752_v29 = vld.sshfl [vmem:[#allocation1 + $0x8] sm:$0xff pattern:$0x73625140]  ;;  %v1750_v24 = vld.sshfl [vmem:[#allocation1] sm:$0xff pattern:$0x73625140] }
 0x3d6   : > { %1758 = vrot.lane.b32.xlu0 %v1752_v29, %s2378_s15  ;;  %1756 = vrot.lane.b32.xlu1 %v1750_v24, %s2378_s15  ;;  %v1754_v27 = vld.sshfl [vmem:[#allocation1 + $0x10] sm:$0xff pattern:$0x73625140] }
 0x3d7   : > { %1822 = vst [vmem:[#allocation1] ss:$4 sm:$0xff] %v1820_v11 }
 0x3d9   : > { %1760 = vrot.lane.b32.xlu2 %v1754_v27, %s2378_s15  ;;  %s2187_s15 = smul.u32 12, %s2440_s22  ;;  %s2032_s22 = scalar_lea.sflag [#allocation4], %s215_s14 }
 0x3db   : > { %s2043_s6 = scalar_lea.hbm %s3152_s5, %s2187_s15 }
 0x3dc   : > { %s2047_s23 = sshll.u32 %s2043_s6, 4  ;;  %s2048_s23 = int_to_ptr.hbm [resolvable:$true] %s2047_s23 }
 0x3de   : > { %v1825_v15 = vld.sshfl [vmem:[#allocation1 + $0x8] sm:$0xff pattern:$0x73625140]  ;;  %v1823_v30 = vld.sshfl [vmem:[#allocation1] sm:$0xff pattern:$0x73625140] }
 0x3df   : > { %1831 = vrot.lane.b32.xlu0 %v1825_v15, %s2379_s16  ;;  %1829 = vrot.lane.b32.xlu1 %v1823_v30, %s2379_s16  ;;  %v1827_v31 = vld.sshfl [vmem:[#allocation1 + $0x10] sm:$0xff pattern:$0x73625140] }
 0x3e0   : > { %1895 = vst [vmem:[#allocation1] ss:$4 sm:$0xff] %v1893_v33  ;;  %v2162_v33 = vld [vmem:[%s3149_s2 + $0x8] sm:$0x3] }
 0x3e1   : > { %1833 = vrot.lane.b32.xlu2 %v1827_v31, %s2379_s16 }
 0x3e7   : > { %v1898_v34 = vld.sshfl [vmem:[#allocation1 + $0x8] sm:$0xff pattern:$0x73625140]  ;;  %v1896_v40 = vld.sshfl [vmem:[#allocation1] sm:$0xff pattern:$0x73625140] }
 0x3e8   : > { %1904 = vrot.lane.b32.xlu0 %v1898_v34, %s2380_s17  ;;  %1902 = vrot.lane.b32.xlu1 %v1896_v40, %s2380_s17  ;;  %v1900_v36 = vld.sshfl [vmem:[#allocation1 + $0x10] sm:$0xff pattern:$0x73625140] }
 0x3e9   : > { %1906 = vrot.lane.b32.xlu2 %v1900_v36, %s2380_s17  ;;  %s2185_s17 = smul.u32 12, %s215_s14 }
 0x3eb   : > { %s217_s7 = scalar_lea.vmem [#allocation3], %s2185_s17 }
 0x3ec   : > { %s2045_s8 = sshll.u32 %s217_s7, 4  ;;  %s2046_s8 = int_to_ptr.vmem [resolvable:$true] %s2045_s8 }
 0x3fb   : > { %v1325_v60 = vpop.permute.xlu2 %1324 }
 0x403   : > { %v1331_v32 = vpop.permute.xlu2 %1330 }
 0x40b   : > { %v1400_v41 = vpop.permute.xlu2 %1399 }
 0x412   : > { %v1329_v42 = vpop.permute.xlu0 %1328  ;;  %v1327_v43 = vpop.permute.xlu1 %1326 }
 0x413   : > { %v1334_v35 = vsel %vm3255_vm2, %v1329_v42, %v1331_v32  ;;  %v1332_v44 = vsel %vm3256_vm1, %v1325_v60, %v1327_v43  ;;  %v1333_v45 = vsel %vm3257_vm13, %v1327_v43, %v1329_v42  ;;  %v1473_v51 = vpop.permute.xlu2 %1472  ;;  %vm3271_vm2 = vmmov %vm3259_vm0  ;;  %v2166_v43 = vld [vmem:[%s3149_s2 + $0xa] sm:$0x3] }
 0x414   : > { %v1345_v46 = vsel %vm3258_vm8, %v1334_v35, 0  ;;  %v1339_v47 = vsel %vm3259_vm0, %v1332_v44, 0  ;;  %v1342_v48 = vsel %vm3260_vm14, %v1333_v45, 0  ;;  %vm3272_vm1 = vmmov %vm3259_vm0 }
 0x415   : > { %1354 = vmatpush.bf16.msra.mxu3 %v1339_v47  ;;  %1367 = vmatpush.bf16.msrb.mxu0 %v1342_v48  ;;  %vm3273_vm13 = vmmov %vm3263_vm6 }
 0x416   : > { %1380 = vmatpush.bf16.msrb.mxu1 %v1345_v46  ;;  %vm3274_vm8 = vmmov %vm3263_vm6 }
 0x417   : > { %vm3275_vm0 = vmmov %vm3263_vm6 }
 0x418   : > { %2148 = vmatmul.msk.bf16.vlgmr.msra.gmra.mxu3 %vm3261_vm10, %v2147_v50  ;;  %2149 = vmatmul.msk.bf16.vlgmr.msrb.gmra.mxu0 %vm3262_vm12, %v2147_v50  ;;  %vm3276_vm14 = vmmov %vm3270_vm11 }
 0x419   : > { %2150 = vmatmul.msk.bf16.vlgmr.msrb.gmra.mxu1 %vm3263_vm6, %v2147_v50  ;;  %vm3277_vm10 = vmmov %vm3270_vm11 }
 0x41a   : > { %vm3278_vm12 = vmmov %vm3272_vm1 }
 0x41b   : > { %v1398_v52 = vpop.permute.xlu0 %1397  ;;  %v1549_v62 = vpop.permute.xlu2 %1548  ;;  %vm3279_vm6 = vmmov %vm3272_vm1 }
 0x41c   : > { %v1404_v53 = vsel %vm3264_vm4, %v1398_v52, %v1400_v41  ;;  %v1396_v54 = vpop.permute.xlu1 %1395  ;;  %vm3280_vm4 = vmmov %vm3272_vm1 }
 0x41d   : > { %v1413_v57 = vsel %vm3265_vm15, %v1404_v53, 0  ;;  %v1403_v59 = vsel %vm3266_vm3, %v1396_v54, %v1398_v52  ;;  %v1624_v17 = vsel %vm3280_vm4, %v2967_v23, 0  ;;  %vm3281_vm15 = vmmov %vm3275_vm0  ;;  %vm3282_vm3 = vcmask 7168   ;;  %v2170_v52 = vld [vmem:[%s3149_s2 + $0xc] sm:$0x3] }
 0x41e   : > { %v1410_v61 = vsel %vm3267_vm9, %v1403_v59, 0  ;;  %1438 = vmatpush.bf16.msrb.mxu3 %v1413_v57  ;;  %vm3283_vm9 = vmmov %vm3282_vm3  ;;  %v1626_v23 = vsel %vm3272_vm1, %v2969_v18, 0 }
 0x41f   : > { %1425 = vmatpush.bf16.msrb.mxu2 %v1410_v61 }
 0x422   : > { %2151 = vmatmul.msk.bf16.vlgmr.msrb.gmra.mxu2 %vm3268_vm7, %v1310_v37  ;;  %vm3284_vm7 = vmmov %vm3282_vm3 }
 0x423   : > { %v1555_v5 = vpop.permute.xlu2 %1554 }
 0x424   : > { %v1402_v63 = vpop.permute.xlu1 %1401  ;;  %v1471_v58 = vpop.permute.xlu0 %1470 }
 0x425   : > { %v1405_v1 = vsel %vm3269_vm5, %v1400_v41, %v1402_v63  ;;  %v1478_v3 = vsel %vm3270_vm11, %v1471_v58, %v1473_v51  ;;  %vm3285_vm5 = vmmov %vm3272_vm1  ;;  %v2174_v63 = vld [vmem:[%s3149_s2 + $0xe] sm:$0x3]  ;;  %v2178_v58 = vld [vmem:[%s3149_s2 + $0x10] sm:$0x3] }
 0x426   : > { %v1416_v49 = vsel %vm3271_vm2, %v1405_v1, 0  ;;  %v1485_v2 = vsel %vm3272_vm1, %v1478_v3, 0  ;;  %vm3286_vm11 = vmmov %vm3272_vm1 }
 0x427   : > { %1451 = vmatpush.bf16.msra.mxu0 %v1416_v49  ;;  %1500 = vmatpush.bf16.msra.mxu1 %v1485_v2  ;;  %vm3287_vm2 = vmmov %vm3272_vm1 }
 0x428   : > { %2152 = vmatmul.msk.bf16.vlgmr.msrb.gmra.mxu3 %vm3273_vm13, %v1310_v37  ;;  %vm3288_vm13 = vmmov %vm3272_vm1 }
 0x429   : > { %v1628_v28 = vsel %vm3288_vm13, %v2971_v0, 0 }
 0x42a   : > { %2153 = vmatmul.msk.bf16.vlgmr.msra.gmra.mxu0 %vm3274_vm8, %v1310_v37  ;;  %2155 = vmatmul.msk.bf16.vlgmr.msra.gmra.mxu1 %vm3275_vm0, %v2154_v56  ;;  %vm3289_vm8 = vmmov %vm3275_vm0 }
 0x42b   : > { %v1688_v19 = vpop.permute.xlu2 %1687  ;;  %vm3290_vm0 = vmmov %vm3272_vm1 }
 0x42c   : > { %v1475_v55 = vpop.permute.xlu1 %1474  ;;  %v1477_v4 = vpop.permute.xlu0 %1476  ;;  %v1701_v29 = vsel %vm3290_vm0, %v1688_v19, 0  ;;  %vm3295_vm4 = vmmov %vm3290_vm0 }
 0x42d   : > { %v1479_v12 = vsel %vm3276_vm14, %v1473_v51, %v1475_v55  ;;  %v1480_v6 = vsel %vm3277_vm10, %v1475_v55, %v1477_v4  ;;  %vm3291_vm14 = vmmov %vm3289_vm8 }
 0x42e   : > { %v1488_v7 = vsel %vm3278_vm12, %v1479_v12, 0  ;;  %v1491_v13 = vsel %vm3279_vm6, %v1480_v6, 0  ;;  %vm3292_vm10 = vmmov %vm3289_vm8  ;;  %vm3293_vm12 = vcmask 1039360  }
 0x42f   : > { %1513 = vmatpush.bf16.msra.mxu2 %v1488_v7  ;;  %1526 = vmatpush.bf16.msra.mxu3 %v1491_v13  ;;  %vm3294_vm6 = vmmov %vm3293_vm12 }
 0x432   : > { %2156 = vmatmul.msk.bf16.vlgmr.msra.gmra.mxu2 %vm3281_vm15, %v2154_v56  ;;  %vm3296_vm15 = vmmov %vm3290_vm0 }
 0x433   : > { %1637 = vmatpush.bf16.msrb.mxu3 %v1624_v17  ;;  %v1761_v30 = vpop.permute.xlu2 %1760 }
 0x434   : > { %v1553_v8 = vpop.permute.xlu0 %1552  ;;  %v1551_v10 = vpop.permute.xlu1 %1550 }
 0x435   : > { %v1558_v9 = vsel %vm3282_vm3, %v1553_v8, %v1555_v5  ;;  %v1556_v14 = vsel %vm3283_vm9, %v1549_v62, %v1551_v10  ;;  %v1557_v20 = vsel %vm3284_vm7, %v1551_v10, %v1553_v8  ;;  %vm3297_vm3 = vmmov %vm3289_vm8  ;;  %vm3298_vm9 = vcmask 908288  }
 0x436   : > { %v1569_v22 = vsel %vm3285_vm5, %v1558_v9, 0  ;;  %v1563_v25 = vsel %vm3286_vm11, %v1556_v14, 0  ;;  %v1566_v39 = vsel %vm3287_vm2, %v1557_v20, 0  ;;  %vm3299_vm7 = vmmov %vm3298_vm9 }
 0x437   : > { %1578 = vmatpush.bf16.msrb.mxu0 %v1563_v25  ;;  %1591 = vmatpush.bf16.msrb.mxu1 %v1566_v39  ;;  %vm3300_vm5 = vmmov %vm3297_vm3 }
 0x438   : > { %1604 = vmatpush.bf16.msrb.mxu2 %v1569_v22  ;;  %2157 = vmatmul.msk.bf16.vlgmr.msra.gmra.mxu3 %vm3289_vm8, %v2154_v56  ;;  %vm3301_vm11 = vmmov %vm3290_vm0 }
 0x439   : > { %vm3302_vm2 = vmmov %vm3290_vm0 }
 0x43a   : > { %2159 = vmatmul.msk.bf16.vlgmr.msrb.gmra.mxu0 %vm3291_vm14, %v2158_v16  ;;  %2160 = vmatmul.msk.bf16.vlgmr.msrb.gmra.mxu1 %vm3292_vm10, %v2158_v16  ;;  %vm3303_vm1 = vmmov %vm3297_vm3 }
 0x43b   : > { %1650 = vmatpush.bf16.msra.mxu0 %v1626_v23  ;;  %1663 = vmatpush.bf16.msra.mxu1 %v1628_v28  ;;  %vm3304_vm13 = vmmov %vm3303_vm1  ;;  %v1834_v42 = vpop.permute.xlu2 %1833 }
 0x43c   : > { %vm3305_vm8 = vmmov %vm3290_vm0  ;;  %vm3306_vm0 = vcmask 900096  }
 0x43d   : > { %v1774_v41 = vsel %vm3305_vm8, %v1761_v30, 0  ;;  %vm3307_vm14 = vmmov %vm3306_vm0 }
 0x43e   : > { %vm3308_vm10 = vmmov %vm3302_vm2 }
 0x43f   : > { %1736 = vmatpush.bf16.msrb.mxu0 %v1701_v29  ;;  %v1686_v18 = vpop.permute.xlu0 %1685  ;;  %v1684_v24 = vpop.permute.xlu1 %1683 }
 0x440   : > { %v1690_v11 = vsel %vm3293_vm12, %v1686_v18, %v1688_v19  ;;  %v1689_v27 = vsel %vm3294_vm6, %v1684_v24, %v1686_v18  ;;  %vm3309_vm12 = vmmov %vm3302_vm2 }
 0x441   : > { %v1698_v15 = vsel %vm3295_vm4, %v1690_v11, 0  ;;  %v1695_v0 = vsel %vm3296_vm15, %v1689_v27, 0  ;;  %vm3310_vm6 = vmmov %vm3303_vm1 }
 0x442   : > { %1710 = vmatpush.bf16.msra.mxu2 %v1695_v0  ;;  %1723 = vmatpush.bf16.msra.mxu3 %v1698_v15  ;;  %vm3311_vm4 = vmmov %vm3302_vm2 }
 0x443   : > { %2161 = vmatmul.msk.bf16.vlgmr.msrb.gmra.mxu2 %vm3297_vm3, %v2158_v16  ;;  %v1847_v50 = vsel %vm3311_vm4, %v1834_v42, 0  ;;  %v1907_v51 = vpop.permute.xlu2 %1906  ;;  %vm3312_vm15 = vmmov %vm3303_vm1 }
 0x444   : > { %vm3313_vm3 = vmmov %vm3302_vm2 }
 0x445   : > { %v1920_v53 = vsel %vm3313_vm3, %v1907_v51, 0  ;;  %vm3320_vm8 = vmmov %vm3310_vm6  ;;  %vm3328_vm3 = vnez %v3186_v38 }
 0x448   : > { %v1759_v31 = vpop.permute.xlu0 %1758  ;;  %v1757_v34 = vpop.permute.xlu1 %1756  ;;  %2163 = vmatmul.msk.bf16.vlgmr.msrb.gmra.mxu3 %vm3300_vm5, %v2162_v33  ;;  %vm3316_vm5 = vcmask 891904  }
 0x449   : > { %v1763_v40 = vsel %vm3298_vm9, %v1759_v31, %v1761_v30  ;;  %v1762_v36 = vsel %vm3299_vm7, %v1757_v34, %v1759_v31  ;;  %1809 = vmatpush.bf16.msrb.mxu3 %v1774_v41  ;;  %vm3314_vm9 = vmmov %vm3303_vm1 }
 0x44a   : > { %v1771_v60 = vsel %vm3301_vm11, %v1763_v40, 0  ;;  %v1768_v32 = vsel %vm3302_vm2, %v1762_v36, 0  ;;  %2164 = vmatmul.msk.bf16.vlgmr.msra.gmra.mxu0 %vm3303_vm1, %v2162_v33  ;;  %2165 = vmatmul.msk.bf16.vlgmr.msra.gmra.mxu1 %vm3304_vm13, %v2162_v33  ;;  %vm3315_vm7 = vmmov %vm3303_vm1 }
 0x44b   : > { %1783 = vmatpush.bf16.msrb.mxu1 %v1768_v32  ;;  %1796 = vmatpush.bf16.msrb.mxu2 %v1771_v60  ;;  %vm3317_vm11 = vmmov %vm3316_vm5 }
 0x44c   : > { %vm3318_vm1 = vmmov %vm3302_vm2 }
 0x44d   : > { %vm3319_vm13 = vmmov %vm3310_vm6 }
 0x451   : > { %v1832_v35 = vpop.permute.xlu0 %1831  ;;  %v1830_v44 = vpop.permute.xlu1 %1829 }
 0x452   : > { %v1836_v45 = vsel %vm3306_vm0, %v1832_v35, %v1834_v42  ;;  %v1835_v46 = vsel %vm3307_vm14, %v1830_v44, %v1832_v35  ;;  %vm3321_vm0 = vmmov %vm3310_vm6 }
 0x453   : > { %v1844_v47 = vsel %vm3308_vm10, %v1836_v45, 0  ;;  %v1841_v48 = vsel %vm3309_vm12, %v1835_v46, 0  ;;  %2167 = vmatmul.msk.bf16.vlgmr.msra.gmra.mxu2 %vm3310_vm6, %v2166_v43  ;;  %vm3322_vm14 = vmmov %vm3321_vm0 }
 0x454   : > { %1856 = vmatpush.bf16.msra.mxu0 %v1841_v48  ;;  %1869 = vmatpush.bf16.msra.mxu1 %v1844_v47  ;;  %vm3323_vm10 = vmmov %vm3321_vm0 }
 0x455   : > { %1882 = vmatpush.bf16.msra.mxu2 %v1847_v50  ;;  %vm3324_vm12 = vmmov %vm3321_vm0 }
 0x456   : > { %vm3325_vm6 = vmmov %vm3321_vm0 }
 0x457   : > { %vm3326_vm4 = vmmov %vm3321_vm0 }
 0x458   : > { %2168 = vmatmul.msk.bf16.vlgmr.msra.gmra.mxu3 %vm3312_vm15, %v2166_v43  ;;  %vm3327_vm15 = vnez %v3184_v26 }
 0x45a   : > { %v1905_v54 = vpop.permute.xlu0 %1904  ;;  %v1903_v57 = vpop.permute.xlu1 %1902  ;;  %2169 = vmatmul.msk.bf16.vlgmr.msrb.gmra.mxu0 %vm3314_vm9, %v2166_v43  ;;  %2171 = vmatmul.msk.bf16.vlgmr.msrb.gmra.mxu1 %vm3315_vm7, %v2170_v52  ;;  %vm3329_vm9 = vnez %v3182_v21  ;;  %vm3330_vm7 = vcmask 1043456  }
 0x45b   : > { %v1909_v59 = vsel %vm3316_vm5, %v1905_v54, %v1907_v51  ;;  %v1908_v61 = vsel %vm3317_vm11, %v1903_v57, %v1905_v54  ;;  %1955 = vmatpush.bf16.msrb.mxu1 %v1920_v53  ;;  %vm3331_vm5 = vmmov %vm3330_vm7  ;;  %vm3332_vm11 = vcmask 551936  }
 0x45c   : > { %v1917_v37 = vsel %vm3302_vm2, %v1909_v59, 0  ;;  %v1914_v62 = vsel %vm3318_vm1, %v1908_v61, 0  ;;  %vm3333_vm2 = vmmov %vm3331_vm5 }
 0x45d   : > { %1929 = vmatpush.bf16.msra.mxu3 %v1914_v62  ;;  %1942 = vmatpush.bf16.msrb.mxu0 %v1917_v37  ;;  %vm3334_vm1 = vmmov %vm3333_vm2 }
 0x463   : > { %2172 = vmatmul.msk.bf16.vlgmr.msrb.gmra.mxu2 %vm3319_vm13, %v2170_v52  ;;  %vm3335_vm13 = vmmov %vm3332_vm11 }
 0x468   : > { %2173 = vmatmul.msk.bf16.vlgmr.msrb.gmra.mxu3 %vm3320_vm8, %v2170_v52 }
 0x46a   : > { %2175 = vmatmul.msk.bf16.vlgmr.msra.gmra.mxu0 %vm3321_vm0, %v2174_v63  ;;  %2176 = vmatmul.msk.bf16.vlgmr.msra.gmra.mxu1 %vm3322_vm14, %v2174_v63 }
 0x473   : > { %2177 = vmatmul.msk.bf16.vlgmr.msra.gmra.mxu2 %vm3323_vm10, %v2174_v63  ;;  %vm3336_vm10 = vmmov %vm3334_vm1 }
 0x478   : > { %2179 = vmatmul.msk.bf16.vlgmr.msra.gmra.mxu3 %vm3324_vm12, %v2178_v58  ;;  %vm2029_vm12 = vcmask 257024  }
 0x47a   : > { %2180 = vmatmul.msk.bf16.vlgmr.msrb.gmra.mxu0 %vm3325_vm6, %v2178_v58  ;;  %2181 = vmatmul.msk.bf16.vlgmr.msrb.gmra.mxu1 %vm3326_vm4, %v2178_v58  ;;  %vm3337_vm6 = vmmov %vm3334_vm1  ;;  %vm3338_vm4 = vcmask 900096  }
 0x495   : > { %v1369_v1 = vpop.f32.mrf.mxu0 }
 0x496   : > { %v1382_v3 = vpop.f32.mrf.mxu1 }
 0x49b   : > { %v1356_v49 = vpop.f32.mrf.mxu3 }
 0x49d   : > { %v1371_v2 = vpop.f32.mrf.mxu0 }
 0x49e   : > { %v1384_v56 = vpop.f32.mrf.mxu1 }
 0x4a3   : > { %v1358_v55 = vpop.f32.mrf.mxu3 }
 0x4a5   : > { %v1427_v4 = vpop.f32.mrf.mxu2 }
 0x4a6   : > { %v1428_v5 = vadd.f32 %v1427_v4, %v1356_v49 }
 0x4a7   : > { %v1453_v12 = vpop.f32.mrf.mxu0  ;;  %v1502_v6 = vpop.f32.mrf.mxu1 }
 0x4a8   : > { %v1454_v7 = vadd.f32 %v1453_v12, %v1382_v3  ;;  %v1532_v13 = vadd.f32 %v1502_v6, %v1428_v5 }
 0x4ab   : > { %v1440_v17 = vpop.f32.mrf.mxu3 }
 0x4ac   : > { %v1441_v8 = vadd.f32 %v1440_v17, %v1369_v1 }
 0x4ad   : > { %v1429_v10 = vpop.f32.mrf.mxu2 }
 0x4af   : > { %v1455_v9 = vpop.f32.mrf.mxu0  ;;  %v1504_v14 = vpop.f32.mrf.mxu1 }
 0x4b3   : > { %v1442_v20 = vpop.f32.mrf.mxu3 }
 0x4b5   : > { %v1515_v22 = vpop.f32.mrf.mxu2 }
 0x4b6   : > { %v1533_v45 = vadd.f32 %v1515_v22, %v1441_v8 }
 0x4b7   : > { %v1580_v25 = vpop.f32.mrf.mxu0  ;;  %v1593_v39 = vpop.f32.mrf.mxu1 }
 0x4b8   : > { %v1611_v48 = vadd.f32 %v1593_v39, %v1533_v45  ;;  %v1610_v57 = vadd.f32 %v1580_v25, %v1532_v13 }
 0x4bb   : > { %v1528_v19 = vpop.f32.mrf.mxu3 }
 0x4bc   : > { %v1534_v46 = vadd.f32 %v1528_v19, %v1454_v7 }
 0x4bd   : > { %v1517_v23 = vpop.f32.mrf.mxu2 }
 0x4bf   : > { %v1582_v16 = vpop.f32.mrf.mxu0  ;;  %v1595_v28 = vpop.f32.mrf.mxu1 }
 0x4c3   : > { %v1530_v29 = vpop.f32.mrf.mxu3 }
 0x4c6   : > { %v1606_v18 = vpop.f32.mrf.mxu2 }
 0x4c7   : > { %v1652_v24 = vpop.f32.mrf.mxu0  ;;  %v1665_v11 = vpop.f32.mrf.mxu1  ;;  %v1612_v50 = vadd.f32 %v1606_v18, %v1534_v46 }
 0x4c8   : > { %v1670_v52 = vadd.f32 %v1652_v24, %v1611_v48 }
 0x4c9   : > { %v1671_v59 = vadd.f32 %v1665_v11, %v1612_v50 }
 0x4cb   : > { %v1639_v27 = vpop.f32.mrf.mxu3 }
 0x4cc   : > { %v1669_v37 = vadd.f32 %v1639_v27, %v1610_v57 }
 0x4ce   : > { %v1608_v15 = vpop.f32.mrf.mxu2 }
 0x4cf   : > { %v1654_v0 = vpop.f32.mrf.mxu0  ;;  %v1667_v30 = vpop.f32.mrf.mxu1 }
 0x4d3   : > { %v1641_v33 = vpop.f32.mrf.mxu3 }
 0x4d6   : > { %v1712_v31 = vpop.f32.mrf.mxu2 }
 0x4d7   : > { %v1738_v34 = vpop.f32.mrf.mxu0  ;;  %v1785_v40 = vpop.f32.mrf.mxu1  ;;  %v1742_v1 = vadd.f32 %v1712_v31, %v1669_v37 }
 0x4d8   : > { %v1744_v62 = vadd.f32 %v1738_v34, %v1671_v59  ;;  %v2007_v59 = vld [vmem:[%s2474_s9 + $0x8] sm:$0xf] }
 0x4d9   : > { %v1815_v5 = vadd.f32 %v1785_v40, %v1742_v1 }
 0x4db   : > { %v1725_v36 = vpop.f32.mrf.mxu3 }
 0x4dc   : > { %v1743_v61 = vadd.f32 %v1725_v36, %v1670_v52 }
 0x4de   : > { %v1714_v60 = vpop.f32.mrf.mxu2 }
 0x4df   : > { %v1740_v32 = vpop.f32.mrf.mxu0  ;;  %v1787_v41 = vpop.f32.mrf.mxu1 }
 0x4e3   : > { %v1727_v42 = vpop.f32.mrf.mxu3 }
 0x4e6   : > { %v1798_v43 = vpop.f32.mrf.mxu2 }
 0x4e7   : > { %v1858_v35 = vpop.f32.mrf.mxu0  ;;  %v1871_v44 = vpop.f32.mrf.mxu1  ;;  %v1816_v63 = vadd.f32 %v1798_v43, %v1743_v61 }
 0x4e8   : > { %v1888_v6 = vadd.f32 %v1858_v35, %v1815_v5 }
 0x4e9   : > { %v1889_v2 = vadd.f32 %v1871_v44, %v1816_v63 }
 0x4eb   : > { %v1811_v47 = vpop.f32.mrf.mxu3 }
 0x4ec   : > { %v1817_v3 = vadd.f32 %v1811_v47, %v1744_v62 }
 0x4ee   : > { %v1800_v51 = vpop.f32.mrf.mxu2 }
 0x4ef   : > { %v1860_v53 = vpop.f32.mrf.mxu0  ;;  %v1873_v54 = vpop.f32.mrf.mxu1  ;;  %v2006_v51 = vld [vmem:[%s2474_s9] sm:$0xff]  ;;  %s2322_s9 = sshra.s32 %s2048_s23, 4  ;;  %s2323_s9 = int_to_ptr.hbm [resolvable:$true] %s2322_s9 }
 0x4f0   : > { %p2329_p0 = scmp.lt.s32.totalorder %s2323_s9, %s3152_s5 }
 0x4f3   : > { %v1813_v58 = vpop.f32.mrf.mxu3 }
 0x4f6   : > { %v1884_v49 = vpop.f32.mrf.mxu2 }
 0x4f7   : > { %v1890_v56 = vadd.f32 %v1884_v49, %v1817_v3  ;;  %v1944_v55 = vpop.f32.mrf.mxu0  ;;  %v1957_v4 = vpop.f32.mrf.mxu1 }
 0x4f8   : > { %v1962_v12 = vadd.f32 %v1944_v55, %v1889_v2 }
 0x4f9   : > { %v1963_v7 = vadd.f32 %v1957_v4, %v1890_v56 }
 0x4fa   : > { %v1965_v13 = vsel %vm3327_vm15, %v1962_v12, 0.0 }
 0x4fb   : > { %v1931_v17 = vpop.f32.mrf.mxu3  ;;  %v1966_v9 = vsel %vm3328_vm3, %v1963_v7, 0.0  ;;  %v1968_v25 = vsel %vm3330_vm7, %v1965_v13, 0.0 }
 0x4fc   : > { %v1961_v8 = vadd.f32 %v1931_v17, %v1888_v6  ;;  %v1970_v23 = vsel %vm3332_vm11, %v1966_v9, 0.0 }
 0x4fe   : > { %v1886_v10 = vpop.f32.mrf.mxu2  ;;  %v1964_v14 = vsel %vm3329_vm9, %v1961_v8, 0.0 }
 0x4ff   : > { %v1946_v20 = vpop.f32.mrf.mxu0  ;;  %v1959_v22 = vpop.f32.mrf.mxu1  ;;  %v1967_v39 = vsel %vm3331_vm5, %v1964_v14, 0.0 }
 0x500   : > { %v1969_v19 = vadd.f32 %v1968_v25, %v1967_v39 }
 0x502   : > { %v1971_v16 = vadd.f32 %v1970_v23, %v1969_v19 }
 0x503   : > { %v1933_v28 = vpop.f32.mrf.mxu3 }
 0x504   : > { %1972 = vadd.xlane.f32.xlu1 %v1971_v16 }
 0x577   : > { %v1973_v29 = vpop.xlane.xlu1 %1972 }
 0x578   : > { %v1974_v18 = vmul.f32 0.00390625, %v1973_v29 }
 0x57a   : > { %v1975_v24 = vsub.f32 %v1961_v8, %v1974_v18  ;;  %v1976_v11 = vsub.f32 %v1962_v12, %v1974_v18  ;;  %v1977_v27 = vsub.f32 %v1963_v7, %v1974_v18 }
 0x57c   : > { %v1978_v15 = vsel %vm3329_vm9, %v1975_v24, 0.0  ;;  %v1979_v0 = vsel %vm3327_vm15, %v1976_v11, 0.0  ;;  %v1980_v30 = vsel %vm3328_vm3, %v1977_v27, 0.0 }
 0x57d   : > { %v1981_v33 = vmul.f32 %v1978_v15, %v1978_v15  ;;  %v1982_v31 = vmul.f32 %v1979_v0, %v1979_v0  ;;  %v1983_v34 = vmul.f32 %v1980_v30, %v1980_v30 }
 0x57f   : > { %v1984_v40 = vsel %vm3333_vm2, %v1981_v33, 0.0  ;;  %v1985_v36 = vsel %vm3334_vm1, %v1982_v31, 0.0  ;;  %v1987_v32 = vsel %vm3335_vm13, %v1983_v34, 0.0 }
 0x580   : > { %v1986_v60 = vadd.f32 %v1985_v36, %v1984_v40 }
 0x582   : > { %v1988_v41 = vadd.f32 %v1987_v32, %v1986_v60 }
 0x584   : > { %1989 = vadd.xlane.f32.xlu0 %v1988_v41 }
 0x5f7   : > { %v1990_v21 = vpop.xlane.xlu0 %1989 }
 0x5f8   : > { %v1991_v42 = vmul.f32 0.00390625, %v1990_v21 }
 0x5fa   : > { %v1992_v26 = vadd.f32 1e-05, %v1991_v42 }
 0x5fc   : > { %2306 = vrsqrt.f32 %v1992_v26  ;;  %vm1999_vm0 = vweird.f32 %v1992_v26 }
 0x602   : > { %v2307_v43 = vpop.eup %2306 }
 0x603   : > { %v1994_v38 = vmul.f32 %v2307_v43, %v1992_v26  ;;  %vm2000_vm8 = vweird.f32 %v2307_v43 }
 0x604   : > { %vm2001_vm14 = vmor %vm1999_vm0, %vm2000_vm8 }
 0x605   : > { %v1995_v35 = vmul.f32 %v2307_v43, %v1994_v38 }
 0x607   : > { %v1996_v44 = vmul.f32 0.5, %v1995_v35 }
 0x609   : > { %v1997_v45 = vsub.f32 1.5, %v1996_v44 }
 0x60b   : > { %v1998_v46 = vmul.f32 %v2307_v43, %v1997_v45 }
 0x60d   : > { %v2002_v47 = vsel %vm2001_vm14, %v2307_v43, %v1998_v46 }
 0x60e   : > { %v2004_v48 = vmul.f32 %v2002_v47, %v1976_v11  ;;  %v2003_v50 = vmul.f32 %v2002_v47, %v1975_v24  ;;  %v2005_v57 = vmul.f32 %v2002_v47, %v1977_v27 }
 0x610   : > { %v2010_v52 = vrot.slane %v2004_v48, 4  ;;  %v2014_v61 = vadd.f32 %v2007_v59, %v2005_v57 }
 0x612   : > { %v2011_v53 = vsel %vm3336_vm10, %v2003_v50, %v2010_v52 }
 0x613   : > { %v2013_v54 = vadd.f32 %v2011_v53, %v2006_v51 }
 0x615   : > { %2017 = vrot.lane.b32.xlu2 %v2013_v54, %s2379_s16 }
 0x61d   : > { %2019 = vrot.lane.b32.xlu2 %v2014_v61, %s2379_s16  ;;  %s2324_s16 = scalar_lea.hbm %s2323_s9, 12 }
 0x61e   : > { %p2325_p11 = scmp.ne.s32.totalorder %s2323_s9, %s2324_s16  ;;  %p2330_p1 = scmp.lt.s32.totalorder %s2328_s11, %s2324_s16 }
 0x620   : > { %p2326_p12 = pnand %p2325_p11, %p2457_p5  ;;  %p2331_p2 = por %p2330_p1, %p2329_p0 }
 0x622   : > { %p2327_p13 = pneg %p2326_p12 }
 0x624   : > { %p2332_p3 = pnand %p2331_p2, %p2327_p13 }
 0x66f   : > { %v2018_v37 = vpop.permute.xlu2 %2017 }
 0x670   : > { %v2021_v63 = vrot.slane %v2018_v37, 4 }
 0x677   : > { %v2020_v62 = vpop.permute.xlu2 %2019 }
 0x678   : > { %v2022_v58 = vrot.slane %v2020_v62, 4  ;;  %2030 = vst.msk [vmem:[%s217_s7 + $0x8] sm:$0xf] %vm2029_vm12, %v2020_v62 }
 0x67a   : > { %v2023_v1 = vsel %vm3337_vm6, %v2021_v63, %v2022_v58 }
 0x67b   : > { %v2025_v3 = vsel %vm3338_vm4, %v2018_v37, %v2023_v1 }
 0x67c   : > { %2028 = vst [vmem:[%s217_s7] sm:$0xff] %v2025_v3 }
 0x67d   : > { %2335 = shalt.err (!%p2332_p3)
}
 0x67e   : > { %2188 = dma.vmem_to_hbm [thread:$0]  (%p2457_p5), %s2046_s8, 192, %s2048_s23, %s2032_s22  }
 0x67f PF: > { %p2194_p4 = scmp.ge.s32.totalorder %s2370_s21, 2  ;;  %s2059_s14 = sand.u32 1, %s2358_s18  }
 0x680   : > { %s2060_s15 = scalar_lea.sflag [#allocation4], %s2059_s14 }
 0x681   : > { %p2191_p7 = pnand %p2194_p4, %p2461_p6 }
 0x683   : > { %p2192_p8 = pneg %p2191_p7 }
 0x685   : > { %2353 = dma.done.wait (%p2192_p8), %s2060_s15, 192  }
 0x686   : > { %2355 = vsyncadd (%p2192_p8), %s2060_s15, 4294967104  ;;  %p15_p9 = scmp.ge.s32.totalorder %s2444_s24, 4   ;;  %s3339_s18 = smov %s2362_s19 }
 0x687   : > { %s3340_s19 = smov %s2366_s20  ;;  %s3341_s20 = smov %s2455_s27 }
 0x688   : > { %s3342_s21 = smov %s2444_s24  ;;  %17 = sbr.rel (!%p15_p9) target bundleno = 3 (0x3), region = 100 }
 0x68d   :  { %2066 = vsyncpa [#allocation4], 1 }
 0x68e   :  { %2068 = vsyncpa [#allocation4 + $0x1], 1 }

</bundles_post_ra>
